<compile_context>
chip_gen: v5e
topology: v5e:2x2
jax: 0.10.0
libtpu: 0.0.40
codegen_flags: <defaults>
</compile_context>

<pallas_src>
import functools
import math

import jax
import jax.numpy as jnp
from jax import lax
from jax.experimental import pallas as pl
from jax.experimental.pallas import tpu as pltpu

_EPS = 1e-5  # nn.LayerNorm default


def _self_attn_kernel(x_ref, gamma_ref, beta_ref,
                      wq_ref, bq_ref, wk_ref, bk_ref,
                      wv_ref, bv_ref, wo_ref, bo_ref,
                      o_ref, *, tkv, compute_dtype):
    x = x_ref[0].astype(jnp.float32)                     # (C, HW)
    c, hw = x.shape
    num_kv = hw // tkv

    # ---- LayerNorm over (C, H, W): two-pass mean / variance ----
    mean = jnp.mean(x)
    xc = x - mean
    var = jnp.mean(xc * xc)
    inv = lax.rsqrt(var + _EPS)
    normed = (xc * inv * gamma_ref[...] + beta_ref[...]).astype(compute_dtype)

    # ---- 1x1-conv projections: (C,C) @ (C,HW) MXU matmuls, f32 accumulation.
    # The 1/sqrt(C) attention scale is already folded into wq/bq by the wrapper.
    q = (jnp.dot(wq_ref[...], normed, preferred_element_type=jnp.float32)
         + bq_ref[...]).astype(compute_dtype)            # (C, HW)
    k = (jnp.dot(wk_ref[...], normed, preferred_element_type=jnp.float32)
         + bk_ref[...]).astype(compute_dtype)            # (C, HW)
    v = (jnp.dot(wv_ref[...], normed, preferred_element_type=jnp.float32)
         + bv_ref[...]).astype(compute_dtype)            # (C, HW)

    # ---- flash / online-softmax attention over KV blocks ----
    # s_blk[j, i] = sum_c k[c, j0+j] * q[c, i]  -> keys on sublanes, queries on
    # lanes, so the softmax statistics (1, HW) stay lane-aligned with the
    # (C, HW) accumulator and output.
    m = l = acc = None
    for b in range(num_kv):
        j = b * tkv                                      # static, 128-aligned
        k_blk = k[:, j:j + tkv]                          # (C, TKV) tile-aligned view
        v_blk = v[:, j:j + tkv]                          # (C, TKV)
        s_blk = lax.dot_general(k_blk, q, (((0,), (0,)), ((), ())),
                                preferred_element_type=jnp.float32)   # (TKV, HW)
        if b == 0:
            m = jnp.max(s_blk, axis=0, keepdims=True)                 # (1, HW)
            p = jnp.exp(s_blk - m)                                    # (TKV, HW) f32
            l = jnp.sum(p, axis=0, keepdims=True)                     # (1, HW)
            acc = jnp.dot(v_blk, p.astype(compute_dtype),
                          preferred_element_type=jnp.float32)         # (C, HW) f32
        else:
            m_new = jnp.maximum(m, jnp.max(s_blk, axis=0, keepdims=True))
            alpha = jnp.exp(m - m_new)                                # (1, HW)
            p = jnp.exp(s_blk - m_new)
            l = alpha * l + jnp.sum(p, axis=0, keepdims=True)
            acc = alpha * acc + jnp.dot(v_blk, p.astype(compute_dtype),
                                        preferred_element_type=jnp.float32)
            m = m_new

    # softmax denominator folded once into the (C, HW) accumulator (C*HW muls
    # instead of dividing (HW,HW) probabilities); EUP approx reciprocal on the
    # bf16 path, exact reciprocal on the fp32 correctness path.
    approx = jnp.dtype(compute_dtype) != jnp.dtype(jnp.float32)
    attn = (acc * pl.reciprocal(l, approx=approx)).astype(compute_dtype)

    # ---- output projection + residual ----
    res = jnp.dot(wo_ref[...], attn, preferred_element_type=jnp.float32) + bo_ref[...]
    o_ref[0] = (x + res).astype(o_ref.dtype)


def _pick_tkv(hw, target=512):
    """Largest 128-multiple KV block size <= target that divides HW."""
    if hw <= target:
        return hw
    for t in range(target, 127, -1):
        if hw % t == 0 and t % 128 == 0:
            return t
    return hw  # fallback: single block


def self_attention_block(x_nchw, gamma, beta, wq, bq, wk, bk, wv, bv, wo, bo,
                         *, compute_dtype=jnp.bfloat16, tkv=None):
    """x_nchw: (N, C, H, W); gamma/beta: (C, H, W); w*: (C_out, C_in); b*: (C,)."""
    N, C, H, W = x_nchw.shape
    HW = H * W
    cdt = jnp.dtype(compute_dtype)
    if tkv is None:
        tkv = _pick_tkv(HW)
    assert HW % tkv == 0, (HW, tkv)

    scale = 1.0 / math.sqrt(C)

    # NCHW is already row-major (N, C, HW): these reshapes are free.
    x = x_nchw.reshape(N, C, HW)
    g = gamma.reshape(C, HW).astype(cdt)
    bt = beta.reshape(C, HW).astype(cdt)

    args = (x, g, bt,
            (wq * scale).astype(cdt), (bq * scale).reshape(C, 1).astype(jnp.float32),
            wk.astype(cdt), bk.reshape(C, 1).astype(jnp.float32),
            wv.astype(cdt), bv.reshape(C, 1).astype(jnp.float32),
            wo.astype(cdt), bo.reshape(C, 1).astype(jnp.float32))

    def full(shape):
        return pl.BlockSpec(shape, lambda n, _nd=len(shape): (0,) * _nd)

    grid_spec = pltpu.PrefetchScalarGridSpec(
        num_scalar_prefetch=0,
        grid=(N,),
        in_specs=[
            pl.BlockSpec((1, C, HW), lambda n: (n, 0, 0)),   # x
            full((C, HW)), full((C, HW)),                    # gamma, beta
            full((C, C)), full((C, 1)),                      # wq, bq (pre-scaled)
            full((C, C)), full((C, 1)),                      # wk, bk
            full((C, C)), full((C, 1)),                      # wv, bv
            full((C, C)), full((C, 1)),                      # wo, bo
        ],
        out_specs=pl.BlockSpec((1, C, HW), lambda n: (n, 0, 0)),
    )

    # Explicit scoped-VMEM budget: per-step estimate with headroom, capped at
    # 64 MiB so the same setting is valid on v7x (64 MiB physical VMEM).
    in_bytes = jnp.dtype(x_nchw.dtype).itemsize
    c_bytes = cdt.itemsize
    est = (2 * 2 * C * HW * in_bytes              # x + out, double-buffered
           + 2 * 2 * C * HW * c_bytes             # gamma, beta (double-buffered)
           + 2 * 4 * (C * C * c_bytes + C * 4)    # weights + biases
           + 4 * C * HW * c_bytes                 # normed, q, k, v
           + C * HW * 4                           # f32 attention accumulator
           + tkv * HW * (4 + c_bytes)             # live score block + probs
           + 8 * HW * 4)                          # running max / sum, misc
    vmem_limit = int(min(max(int(est * 1.5), 32 * 1024 * 1024), 64 * 1024 * 1024))

    kernel = functools.partial(_self_attn_kernel, tkv=tkv, compute_dtype=cdt)

    out = pl.pallas_call(
        kernel,
        out_shape=jax.ShapeDtypeStruct((N, C, HW), x_nchw.dtype),
        grid_spec=grid_spec,
        compiler_params=pltpu.CompilerParams(
            # batch elements are independent -> shard across v7x's 2 TensorCores
            dimension_semantics=("parallel",),
            vmem_limit_bytes=vmem_limit),
    )(*args)

    return out.reshape(N, C, H, W)   # free


def reference(x_nchw, gamma, beta, wq, bq, wk, bk, wv, bv, wo, bo):
    """Pure-JAX mirror of the PyTorch forward (for a correctness check)."""
    N, C, H, W = x_nchw.shape
    HW = H * W
    xf = x_nchw.astype(jnp.float32)
    mean = xf.reshape(N, -1).mean(-1).reshape(N, 1, 1, 1)
    var = ((xf - mean) ** 2).reshape(N, -1).mean(-1).reshape(N, 1, 1, 1)
    normed = (xf - mean) / jnp.sqrt(var + _EPS) * gamma[None] + beta[None]
    nf = normed.reshape(N, C, HW)

    def conv(wt, bb):
        return jnp.einsum('oi,nip->nop', wt, nf) + bb[None, :, None]

    q = conv(wq, bq)
    k = conv(wk, bk)
    v = conv(wv, bv)
    qp = q.transpose(0, 2, 1)                                   # (N, HW, C)
    qk = jnp.einsum('nic,ncj->nij', qp, k) / (C ** 0.5)
    sm = jax.nn.softmax(qk, -1)
    res = jnp.einsum('ncj,nij->nci', v, sm).reshape(N, C, H, W)
    res = jnp.einsum('oi,nihw->nohw', wo, res) + bo[None, :, None, None]
    return x_nchw + res


if __name__ == "__main__":
    # dim=8, shape=(8, 16, 16); HW=256 -> 2 KV blocks at tkv=128 so the
    # online-softmax rescale path is exercised by the test.
    N, C, H, W = 2, 8, 16, 16
    key = jax.random.PRNGKey(0)
    keys = jax.random.split(key, 16)

    x = jax.random.normal(keys[0], (N, C, H, W), jnp.float32)

    # LayerNorm params (perturbed from identity so the norm is non-trivial)
    gamma = 1.0 + 0.1 * jax.random.normal(keys[1], (C, H, W), jnp.float32)
    beta = 0.1 * jax.random.normal(keys[2], (C, H, W), jnp.float32)

    # 1x1 conv params (PyTorch-style uniform init, weights squeezed to (C, C))
    bound = 1.0 / math.sqrt(C)

    def conv_init(kw, kb):
        w = jax.random.uniform(kw, (C, C), jnp.float32, -bound, bound)
        b = jax.random.uniform(kb, (C,), jnp.float32, -bound, bound)
        return w, b

    wq, bq = conv_init(keys[3], keys[4])
    wk, bk = conv_init(keys[5], keys[6])
    wv, bv = conv_init(keys[7], keys[8])
    wo, bo = conv_init(keys[9], keys[10])

    ref = jax.block_until_ready(
        reference(x, gamma, beta, wq, bq, wk, bk, wv, bv, wo, bo))

    # fp32 path: tight numerical check of the flash/online-softmax rewrite.
    out_f32 = jax.block_until_ready(
        self_attention_block(x, gamma, beta, wq, bq, wk, bk, wv, bv, wo, bo,
                             compute_dtype=jnp.float32, tkv=128))
    assert out_f32.shape == (N, C, H, W)
    err_f32 = float(jnp.max(jnp.abs(out_f32 - ref)))
    assert err_f32 < 1e-4, err_f32

    # bf16 MXU path (production configuration): relaxed tolerance.
    out_bf16 = jax.block_until_ready(
        self_attention_block(x, gamma, beta, wq, bq, wk, bk, wv, bv, wo, bo,
                             compute_dtype=jnp.bfloat16, tkv=128))
    err_bf16 = float(jnp.max(jnp.abs(out_bf16 - ref)))
    assert err_bf16 < 1e-1, err_bf16

    print("KERNEL_OK")
</pallas_src>

<mosaic_0001>
module attributes {stable_mosaic.version = 11 : i64} {
  func.func @_self_attn_kernel(%arg0: i32, %arg1: memref<1x8x256xf32, #tpu.memory_space<vmem>>, %arg2: memref<8x256xf32, #tpu.memory_space<vmem>>, %arg3: memref<8x256xf32, #tpu.memory_space<vmem>>, %arg4: memref<8x8xf32, #tpu.memory_space<vmem>>, %arg5: memref<8x1xf32, #tpu.memory_space<vmem>>, %arg6: memref<8x8xf32, #tpu.memory_space<vmem>>, %arg7: memref<8x1xf32, #tpu.memory_space<vmem>>, %arg8: memref<8x8xf32, #tpu.memory_space<vmem>>, %arg9: memref<8x1xf32, #tpu.memory_space<vmem>>, %arg10: memref<8x8xf32, #tpu.memory_space<vmem>>, %arg11: memref<8x1xf32, #tpu.memory_space<vmem>>, %arg12: memref<1x8x256xf32, #tpu.memory_space<vmem>>) attributes {dimension_semantics = [#tpu.dimension_semantics<parallel>], iteration_bounds = array<i64: 2>, scalar_prefetch = 0 : i64, scratch_operands = 0 : i64, tpu.core_type = #tpu.core_type<tc>, window_params = [{transform_indices = @transform_0, window_bounds = array<i64: 1, 8, 256>}, {pipeline_mode = #tpu.pipeline_mode<synchronous>, transform_indices = @transform_1, window_bounds = array<i64: 8, 256>}, {pipeline_mode = #tpu.pipeline_mode<synchronous>, transform_indices = @transform_2, window_bounds = array<i64: 8, 256>}, {pipeline_mode = #tpu.pipeline_mode<synchronous>, transform_indices = @transform_3, window_bounds = array<i64: 8, 8>}, {pipeline_mode = #tpu.pipeline_mode<synchronous>, transform_indices = @transform_4, window_bounds = array<i64: 8, 1>}, {pipeline_mode = #tpu.pipeline_mode<synchronous>, transform_indices = @transform_5, window_bounds = array<i64: 8, 8>}, {pipeline_mode = #tpu.pipeline_mode<synchronous>, transform_indices = @transform_6, window_bounds = array<i64: 8, 1>}, {pipeline_mode = #tpu.pipeline_mode<synchronous>, transform_indices = @transform_7, window_bounds = array<i64: 8, 8>}, {pipeline_mode = #tpu.pipeline_mode<synchronous>, transform_indices = @transform_8, window_bounds = array<i64: 8, 1>}, {pipeline_mode = #tpu.pipeline_mode<synchronous>, transform_indices = @transform_9, window_bounds = array<i64: 8, 8>}, {pipeline_mode = #tpu.pipeline_mode<synchronous>, transform_indices = @transform_10, window_bounds = array<i64: 8, 1>}, {transform_indices = @transform_11, window_bounds = array<i64: 1, 8, 256>}]} {
    %c0 = arith.constant 0 : index
    %c0_0 = arith.constant 0 : index
    %c0_1 = arith.constant 0 : index
    %0 = vector.load %arg1[%c0, %c0_0, %c0_1] : memref<1x8x256xf32, #tpu.memory_space<vmem>>, vector<1x8x256xf32>
    %1 = vector.shape_cast %0 : vector<1x8x256xf32> to vector<8x256xf32>
    %2 = vector.shape_cast %1 : vector<8x256xf32> to vector<1x8x256xf32>
    %cst = arith.constant dense<0.000000e+00> : vector<1xf32>
    %3 = vector.multi_reduction <add>, %2, %cst [1, 2] : vector<1x8x256xf32> to vector<1xf32>
    %4 = vector.shape_cast %3 : vector<1xf32> to vector<1x1x1xf32>
    %5 = vector.extract %4[0, 0, 0] : f32 from vector<1x1x1xf32>
    %cst_2 = arith.constant 2.048000e+03 : f32
    %6 = arith.divf %5, %cst_2 : f32
    %7 = vector.broadcast %6 : f32 to vector<8x256xf32>
    %8 = arith.subf %1, %7 : vector<8x256xf32>
    %9 = arith.mulf %8, %8 : vector<8x256xf32>
    %10 = vector.shape_cast %9 : vector<8x256xf32> to vector<1x8x256xf32>
    %cst_3 = arith.constant dense<0.000000e+00> : vector<1xf32>
    %11 = vector.multi_reduction <add>, %10, %cst_3 [1, 2] : vector<1x8x256xf32> to vector<1xf32>
    %12 = vector.shape_cast %11 : vector<1xf32> to vector<1x1x1xf32>
    %13 = vector.extract %12[0, 0, 0] : f32 from vector<1x1x1xf32>
    %cst_4 = arith.constant 2.048000e+03 : f32
    %14 = arith.divf %13, %cst_4 : f32
    %cst_5 = arith.constant 9.99999974E-6 : f32
    %15 = arith.addf %14, %cst_5 : f32
    %16 = math.rsqrt %15 : f32
    %17 = vector.broadcast %16 : f32 to vector<8x256xf32>
    %18 = arith.mulf %8, %17 : vector<8x256xf32>
    %c0_6 = arith.constant 0 : index
    %c0_7 = arith.constant 0 : index
    %19 = vector.load %arg2[%c0_6, %c0_7] : memref<8x256xf32, #tpu.memory_space<vmem>>, vector<8x256xf32>
    %20 = arith.mulf %18, %19 : vector<8x256xf32>
    %c0_8 = arith.constant 0 : index
    %c0_9 = arith.constant 0 : index
    %21 = vector.load %arg3[%c0_8, %c0_9] : memref<8x256xf32, #tpu.memory_space<vmem>>, vector<8x256xf32>
    %22 = arith.addf %20, %21 : vector<8x256xf32>
    %c0_10 = arith.constant 0 : index
    %c0_11 = arith.constant 0 : index
    %23 = vector.load %arg4[%c0_10, %c0_11] : memref<8x8xf32, #tpu.memory_space<vmem>>, vector<8x8xf32>
    %cst_12 = arith.constant dense<0.000000e+00> : vector<8x256xf32>
    %24 = tpu.matmul %23, %22, %cst_12 {dimension_numbers = #tpu.dot_dimension_numbers<[1], [0], [0], [1], [0, 0, 1, 1], [], []>} : vector<8x8xf32>, vector<8x256xf32>, vector<8x256xf32> -> vector<8x256xf32>
    %c0_13 = arith.constant 0 : index
    %c0_14 = arith.constant 0 : index
    %25 = vector.load %arg5[%c0_13, %c0_14] : memref<8x1xf32, #tpu.memory_space<vmem>>, vector<8x1xf32>
    %26 = vector.broadcast %25 : vector<8x1xf32> to vector<8x256xf32>
    %27 = arith.addf %24, %26 : vector<8x256xf32>
    %c0_15 = arith.constant 0 : index
    %c0_16 = arith.constant 0 : index
    %28 = vector.load %arg6[%c0_15, %c0_16] : memref<8x8xf32, #tpu.memory_space<vmem>>, vector<8x8xf32>
    %cst_17 = arith.constant dense<0.000000e+00> : vector<8x256xf32>
    %29 = tpu.matmul %28, %22, %cst_17 {dimension_numbers = #tpu.dot_dimension_numbers<[1], [0], [0], [1], [0, 0, 1, 1], [], []>} : vector<8x8xf32>, vector<8x256xf32>, vector<8x256xf32> -> vector<8x256xf32>
    %c0_18 = arith.constant 0 : index
    %c0_19 = arith.constant 0 : index
    %30 = vector.load %arg7[%c0_18, %c0_19] : memref<8x1xf32, #tpu.memory_space<vmem>>, vector<8x1xf32>
    %31 = vector.broadcast %30 : vector<8x1xf32> to vector<8x256xf32>
    %32 = arith.addf %29, %31 : vector<8x256xf32>
    %c0_20 = arith.constant 0 : index
    %c0_21 = arith.constant 0 : index
    %33 = vector.load %arg8[%c0_20, %c0_21] : memref<8x8xf32, #tpu.memory_space<vmem>>, vector<8x8xf32>
    %cst_22 = arith.constant dense<0.000000e+00> : vector<8x256xf32>
    %34 = tpu.matmul %33, %22, %cst_22 {dimension_numbers = #tpu.dot_dimension_numbers<[1], [0], [0], [1], [0, 0, 1, 1], [], []>} : vector<8x8xf32>, vector<8x256xf32>, vector<8x256xf32> -> vector<8x256xf32>
    %c0_23 = arith.constant 0 : index
    %c0_24 = arith.constant 0 : index
    %35 = vector.load %arg9[%c0_23, %c0_24] : memref<8x1xf32, #tpu.memory_space<vmem>>, vector<8x1xf32>
    %36 = vector.broadcast %35 : vector<8x1xf32> to vector<8x256xf32>
    %37 = arith.addf %34, %36 : vector<8x256xf32>
    %38 = vector.extract_strided_slice %32 {offsets = [0, 0], sizes = [8, 128], strides = [1, 1]} : vector<8x256xf32> to vector<8x128xf32>
    %39 = vector.extract_strided_slice %37 {offsets = [0, 0], sizes = [8, 128], strides = [1, 1]} : vector<8x256xf32> to vector<8x128xf32>
    %cst_25 = arith.constant dense<0.000000e+00> : vector<128x256xf32>
    %40 = tpu.matmul %38, %27, %cst_25 {dimension_numbers = #tpu.dot_dimension_numbers<[0], [0], [1], [1], [0, 1, 1, 1], [], []>} : vector<8x128xf32>, vector<8x256xf32>, vector<128x256xf32> -> vector<128x256xf32>
    %cst_26 = arith.constant dense<0xFF800000> : vector<256xf32>
    %41 = vector.multi_reduction <maximumf>, %40, %cst_26 [0] : vector<128x256xf32> to vector<256xf32>
    %42 = vector.shape_cast %41 : vector<256xf32> to vector<1x256xf32>
    %43 = vector.broadcast %42 : vector<1x256xf32> to vector<128x256xf32>
    %44 = arith.subf %40, %43 : vector<128x256xf32>
    %45 = math.exp %44 : vector<128x256xf32>
    %cst_27 = arith.constant dense<0.000000e+00> : vector<256xf32>
    %46 = vector.multi_reduction <add>, %45, %cst_27 [0] : vector<128x256xf32> to vector<256xf32>
    %47 = vector.shape_cast %46 : vector<256xf32> to vector<1x256xf32>
    %cst_28 = arith.constant dense<0.000000e+00> : vector<8x256xf32>
    %48 = tpu.matmul %39, %45, %cst_28 {dimension_numbers = #tpu.dot_dimension_numbers<[1], [0], [0], [1], [0, 0, 1, 1], [], []>} : vector<8x128xf32>, vector<128x256xf32>, vector<8x256xf32> -> vector<8x256xf32>
    %49 = vector.extract_strided_slice %32 {offsets = [0, 128], sizes = [8, 128], strides = [1, 1]} : vector<8x256xf32> to vector<8x128xf32>
    %50 = vector.extract_strided_slice %37 {offsets = [0, 128], sizes = [8, 128], strides = [1, 1]} : vector<8x256xf32> to vector<8x128xf32>
    %cst_29 = arith.constant dense<0.000000e+00> : vector<128x256xf32>
    %51 = tpu.matmul %49, %27, %cst_29 {dimension_numbers = #tpu.dot_dimension_numbers<[0], [0], [1], [1], [0, 1, 1, 1], [], []>} : vector<8x128xf32>, vector<8x256xf32>, vector<128x256xf32> -> vector<128x256xf32>
    %cst_30 = arith.constant dense<0xFF800000> : vector<256xf32>
    %52 = vector.multi_reduction <maximumf>, %51, %cst_30 [0] : vector<128x256xf32> to vector<256xf32>
    %53 = vector.shape_cast %52 : vector<256xf32> to vector<1x256xf32>
    %54 = arith.maximumf %42, %53 : vector<1x256xf32>
    %55 = arith.subf %42, %54 : vector<1x256xf32>
    %56 = math.exp %55 : vector<1x256xf32>
    %57 = vector.broadcast %54 : vector<1x256xf32> to vector<128x256xf32>
    %58 = arith.subf %51, %57 : vector<128x256xf32>
    %59 = math.exp %58 : vector<128x256xf32>
    %60 = arith.mulf %56, %47 : vector<1x256xf32>
    %cst_31 = arith.constant dense<0.000000e+00> : vector<256xf32>
    %61 = vector.multi_reduction <add>, %59, %cst_31 [0] : vector<128x256xf32> to vector<256xf32>
    %62 = vector.shape_cast %61 : vector<256xf32> to vector<1x256xf32>
    %63 = arith.addf %60, %62 : vector<1x256xf32>
    %64 = vector.broadcast %56 : vector<1x256xf32> to vector<8x256xf32>
    %65 = arith.mulf %64, %48 : vector<8x256xf32>
    %cst_32 = arith.constant dense<0.000000e+00> : vector<8x256xf32>
    %66 = tpu.matmul %50, %59, %cst_32 {dimension_numbers = #tpu.dot_dimension_numbers<[1], [0], [0], [1], [0, 0, 1, 1], [], []>} : vector<8x128xf32>, vector<128x256xf32>, vector<8x256xf32> -> vector<8x256xf32>
    %67 = arith.addf %65, %66 : vector<8x256xf32>
    %68 = tpu.reciprocal %63 : vector<1x256xf32> -> vector<1x256xf32>
    %69 = vector.broadcast %68 : vector<1x256xf32> to vector<8x256xf32>
    %70 = arith.mulf %67, %69 : vector<8x256xf32>
    %c0_33 = arith.constant 0 : index
    %c0_34 = arith.constant 0 : index
    %71 = vector.load %arg10[%c0_33, %c0_34] : memref<8x8xf32, #tpu.memory_space<vmem>>, vector<8x8xf32>
    %cst_35 = arith.constant dense<0.000000e+00> : vector<8x256xf32>
    %72 = tpu.matmul %71, %70, %cst_35 {dimension_numbers = #tpu.dot_dimension_numbers<[1], [0], [0], [1], [0, 0, 1, 1], [], []>} : vector<8x8xf32>, vector<8x256xf32>, vector<8x256xf32> -> vector<8x256xf32>
    %c0_36 = arith.constant 0 : index
    %c0_37 = arith.constant 0 : index
    %73 = vector.load %arg11[%c0_36, %c0_37] : memref<8x1xf32, #tpu.memory_space<vmem>>, vector<8x1xf32>
    %74 = vector.broadcast %73 : vector<8x1xf32> to vector<8x256xf32>
    %75 = arith.addf %72, %74 : vector<8x256xf32>
    %76 = arith.addf %1, %75 : vector<8x256xf32>
    %c0_38 = arith.constant 0 : index
    %c0_39 = arith.constant 0 : index
    %c0_40 = arith.constant 0 : index
    %77 = vector.load %arg12[%c0_38, %c0_39, %c0_40] : memref<1x8x256xf32, #tpu.memory_space<vmem>>, vector<1x8x256xf32>
    %78 = vector.shape_cast %77 : vector<1x8x256xf32> to vector<8x256xf32>
    %79 = vector.shape_cast %76 : vector<8x256xf32> to vector<1x8x256xf32>
    tpu.vector_store %arg12[%c0_38, %c0_39, %c0_40], %79 {strides = array<i32>} : memref<1x8x256xf32, #tpu.memory_space<vmem>>, vector<1x8x256xf32>,
    return
  }
  func.func @transform_0(%arg0: i32) -> (i32, i32, i32) {
    %c0_i32 = arith.constant 0 : i32
    %c0_i32_0 = arith.constant 0 : i32
    %c0_i32_1 = arith.constant 0 : i32
    return %arg0, %c0_i32, %c0_i32_0 : i32, i32, i32
  }
  func.func @transform_1(%arg0: i32) -> (i32, i32) {
    %c0_i32 = arith.constant 0 : i32
    %c0_i32_0 = arith.constant 0 : i32
    %c0_i32_1 = arith.constant 0 : i32
    return %c0_i32, %c0_i32_0 : i32, i32
  }
  func.func @transform_2(%arg0: i32) -> (i32, i32) {
    %c0_i32 = arith.constant 0 : i32
    %c0_i32_0 = arith.constant 0 : i32
    %c0_i32_1 = arith.constant 0 : i32
    return %c0_i32, %c0_i32_0 : i32, i32
  }
  func.func @transform_3(%arg0: i32) -> (i32, i32) {
    %c0_i32 = arith.constant 0 : i32
    %c0_i32_0 = arith.constant 0 : i32
    %c0_i32_1 = arith.constant 0 : i32
    return %c0_i32, %c0_i32_0 : i32, i32
  }
  func.func @transform_4(%arg0: i32) -> (i32, i32) {
    %c0_i32 = arith.constant 0 : i32
    %c0_i32_0 = arith.constant 0 : i32
    %c0_i32_1 = arith.constant 0 : i32
    return %c0_i32, %c0_i32_0 : i32, i32
  }
  func.func @transform_5(%arg0: i32) -> (i32, i32) {
    %c0_i32 = arith.constant 0 : i32
    %c0_i32_0 = arith.constant 0 : i32
    %c0_i32_1 = arith.constant 0 : i32
    return %c0_i32, %c0_i32_0 : i32, i32
  }
  func.func @transform_6(%arg0: i32) -> (i32, i32) {
    %c0_i32 = arith.constant 0 : i32
    %c0_i32_0 = arith.constant 0 : i32
    %c0_i32_1 = arith.constant 0 : i32
    return %c0_i32, %c0_i32_0 : i32, i32
  }
  func.func @transform_7(%arg0: i32) -> (i32, i32) {
    %c0_i32 = arith.constant 0 : i32
    %c0_i32_0 = arith.constant 0 : i32
    %c0_i32_1 = arith.constant 0 : i32
    return %c0_i32, %c0_i32_0 : i32, i32
  }
  func.func @transform_8(%arg0: i32) -> (i32, i32) {
    %c0_i32 = arith.constant 0 : i32
    %c0_i32_0 = arith.constant 0 : i32
    %c0_i32_1 = arith.constant 0 : i32
    return %c0_i32, %c0_i32_0 : i32, i32
  }
  func.func @transform_9(%arg0: i32) -> (i32, i32) {
    %c0_i32 = arith.constant 0 : i32
    %c0_i32_0 = arith.constant 0 : i32
    %c0_i32_1 = arith.constant 0 : i32
    return %c0_i32, %c0_i32_0 : i32, i32
  }
  func.func @transform_10(%arg0: i32) -> (i32, i32) {
    %c0_i32 = arith.constant 0 : i32
    %c0_i32_0 = arith.constant 0 : i32
    %c0_i32_1 = arith.constant 0 : i32
    return %c0_i32, %c0_i32_0 : i32, i32
  }
  func.func @transform_11(%arg0: i32) -> (i32, i32, i32) {
    %c0_i32 = arith.constant 0 : i32
    %c0_i32_0 = arith.constant 0 : i32
    %c0_i32_1 = arith.constant 0 : i32
    return %arg0, %c0_i32, %c0_i32_0 : i32, i32, i32
  }
}

</mosaic_0001>

<bundles_post_ra>
// kernel: tpu_custom_call.1
= control target key start
LH: loop header
LB: loop body
LE: loop exit
PB: predicated region body
PF: predicated region fallthrough
CT: control target
= control target key end

     0   :  { %s3179_s0 = inlined_call_operand.hbm [shape: f32[2,8,256], index: 0, kind: input, shape index: {}]   ;;  %s3180_s1 = inlined_call_operand.vmem [shape: f32[8,256], index: 1, kind: input, shape index: {}]   ;;  %s3181_s2 = inlined_call_operand.vmem [shape: f32[8,256], index: 2, kind: input, shape index: {}]   ;;  %s3182_s3 = inlined_call_operand.hbm [shape: f32[8,8], index: 3, kind: input, shape index: {}]   ;;  %s3183_s4 = inlined_call_operand.vmem [shape: f32[8,1], index: 4, kind: input, shape index: {}]   ;;  %s3184_s5 = inlined_call_operand.hbm [shape: f32[8,8], index: 5, kind: input, shape index: {}]   ;;  %s3185_s6 = inlined_call_operand.vmem [shape: f32[8,1], index: 6, kind: input, shape index: {}]   ;;  %s3186_s7 = inlined_call_operand.hbm [shape: f32[8,8], index: 7, kind: input, shape index: {}]   ;;  %s3187_s8 = inlined_call_operand.vmem [shape: f32[8,1], index: 8, kind: input, shape index: {}]   ;;  %s3188_s9 = inlined_call_operand.hbm [shape: f32[8,8], index: 9, kind: input, shape index: {}]   ;;  %s3189_s10 = inlined_call_operand.vmem [shape: f32[8,1], index: 10, kind: input, shape index: {}]   ;;  %s3190_s11 = inlined_call_operand.hbm [shape: f32[2,8,256], index: 11, kind: output, shape index: {}]  }
   0x1   :  { %3192 = sst [smem:[#allocation18_spill]] %s3182_s3 }
   0x2   :  { %3193 = sst [smem:[#allocation19_spill]] %s3184_s5 }
   0x3   :  { %3194 = sst [smem:[#allocation20_spill]] %s3186_s7 }
   0x4   :  { %3195 = sst [smem:[#allocation21_spill]] %s3188_s9 }
   0x5   :  { %16 = vsyncpa [#allocation3], 0 }
   0x6   :  { %18 = vsyncpa [#allocation3 + $0x1], 0 }
   0x7   :  { %19 = vsyncpa [#allocation6], 0 }
   0x8   :  { %20 = vsyncpa [#allocation9], 0 }
   0x9   :  { %21 = vsyncpa [#allocation4], 0 }
   0xa   :  { %23 = vsyncpa [#allocation4 + $0x1], 0  ;;  %s2399_s17 = smov 0   ;;  %s2401_s18 = smov 0  }
   0xb   :  { %s2403_s19 = smov 0   ;;  %s2405_s20 = smov 0  }
   0xc LB: > { %3196 = sst [smem:[#allocation16_spill]] %s2327_s19  ;;  %s2423_s24 = sadd.s32 4294967295, %s2331_s20   ;;  %s2331_s20 = sphi %s2405_s20, %s3214_s20   ;;  %s2327_s19 = sphi %s2403_s19, %s3211_s19   ;;  %s2323_s18 = sphi %s2401_s18, %s3213_s18   ;;  %s2319_s17 = sphi %s2399_s17, %s3212_s17  }
   0xd   : > { %s3197_s3 = sld [smem:[#allocation18_spill]]  ;;  %p1769_p0 = scmp.ge.s32.totalorder %s2331_s20, 1 }
   0xe   : > { %p50_p1 = scmp.eq.s32.totalorder %s2423_s24, 0  ;;  %p296_p2 = scmp.lt.s32.totalorder %s2331_s20, 3 }
   0xf   : > { %s2333_s26 = smov [#allocation5]   ;;  %s3199_s7 = sld [smem:[#allocation20_spill]] }
  0x10   : > { %p2428_p3 = pnand %p1769_p0, %p296_p2  ;;  %s316_s27 = sshll.u32 %s2333_s26, 4  ;;  %s317_s27 = int_to_ptr.vmem [resolvable:$true] %s316_s27 }
  0x11   : > { %s2334_s13 = smov [#allocation8]   ;;  %s3201_s5 = sld [smem:[#allocation19_spill]] }
  0x12   : > { %p1892_p5 = pneg %p2428_p3  ;;  %s346_s14 = sshll.u32 %s2334_s13, 4  ;;  %s347_s14 = int_to_ptr.vmem [resolvable:$true] %s346_s14 }
  0x13   : > { %s314_s23 = sshll.u32 %s3197_s3, 4  ;;  %s3202_s9 = sld [smem:[#allocation21_spill]]  ;;  %s315_s23 = int_to_ptr.hbm [resolvable:$true] %s314_s23 }
  0x14   : > { %p2440_p6 = pnand %p1892_p5, %p50_p1  ;;  %s2335_s29 = smov [#allocation7]  }
  0x15   : > { %s344_s30 = sshll.u32 %s3199_s7, 4  ;;  %s331_s13 = sshll.u32 %s2335_s29, 4  ;;  %s345_s30 = int_to_ptr.hbm [resolvable:$true] %s344_s30  ;;  %s332_s13 = int_to_ptr.vmem [resolvable:$true] %s331_s13 }
  0x16   : > { %1895 = dma.hbm_to_vmem [thread:$0]  (!%p2440_p6), %s315_s23, 128, %s317_s27, [#allocation6]  }
  0x17   : > { %s329_s21 = sshll.u32 %s3201_s5, 4  ;;  %s2336_s23 = smov [#allocation10]   ;;  %s330_s21 = int_to_ptr.hbm [resolvable:$true] %s329_s21 }
  0x18   : > { %1901 = dma.hbm_to_vmem [thread:$0]  (!%p2440_p6), %s345_s30, 128, %s347_s14, [#allocation9]  }
  0x19   : > { %s359_s28 = sshll.u32 %s3202_s9, 4  ;;  %s361_s27 = sshll.u32 %s2336_s23, 4  ;;  %s360_s28 = int_to_ptr.hbm [resolvable:$true] %s359_s28  ;;  %s362_s27 = int_to_ptr.vmem [resolvable:$true] %s361_s27 }
  0x1a   : > { %1898 = dma.hbm_to_vmem [thread:$0]  (!%p2440_p6), %s330_s21, 128, %s332_s13, [#allocation6]  }
  0x1b   : > { %1904 = dma.hbm_to_vmem [thread:$0]  (!%p2440_p6), %s360_s28, 128, %s362_s27, [#allocation9]  }
  0x1c   : > { %s1768_s30 = sadd.s32 4294967294, %s2331_s20   ;;  %s2460_s14 = sadd.s32 1, %s2331_s20  }
  0x1d   : > { %s33_s15 = ssub.s32 %s2331_s20, %s2460_s14  ;;  %s36_s16 = sadd.s32 1, %s2327_s19 }
  0x1e   : > { %p34_p7 = scmp.eq.s32.totalorder %s33_s15, 0  ;;  %p43_p8 = scmp.ne.s32.totalorder %s2327_s19, %s2323_s18 }
  0x1f   : > { %p44_p9 = scmp.eq.s32.totalorder %s2331_s20, 0  ;;  %p49_p10 = scmp.ne.s32.totalorder %s2323_s18, %s2319_s17 }
  0x20   : > { %s2471_s21 = scalar_select %p34_p7, %s2327_s19, %s36_s16  }
  0x21   : > { %p2473_p11 = por %p44_p9, %p43_p8  ;;  %p2479_p12 = por %p50_p1, %p49_p10 }
  0x22   : > { %3203 = sst [smem:[#allocation17_spill]] %s2471_s21  ;;  %p283_p13 = scmp.eq.s32.totalorder %s2423_s24, 1 }
  0x23   : > { %p289_p0 = scmp.eq.s32.totalorder %s1768_s30, 1  ;;  %p1917_p2 = scmp.lt.s32.totalorder %s2331_s20, 2 }
  0x24   : > { %s375_s26 = sand.u32 1, %s2327_s19   ;;  %p2486_p5 = por %p283_p13, %p43_p8 }
  0x25   : > { %p2490_p6 = por %p289_p0, %p49_p10  ;;  %s1775_s13 = sshll.u32 %s375_s26, 4 }
  0x26   : > { %s1862_s23 = sshll.u32 %s2331_s20, 4  ;;  %s379_s3 = scalar_lea.vmem [#allocation2], %s1775_s13 }
  0x27   : > { %s384_s16 = scalar_lea.hbm %s3179_s0, %s1862_s23  ;;  %s388_s5 = sshll.u32 %s379_s3, 4  ;;  %s389_s5 = int_to_ptr.vmem [resolvable:$true] %s388_s5 }
  0x28   : > { %s386_s7 = sshll.u32 %s384_s16, 4  ;;  %p2500_p7 = pnand %p1917_p2, %p2473_p11  ;;  %s387_s7 = int_to_ptr.hbm [resolvable:$true] %s386_s7 }
  0x29   : > { %s376_s9 = scalar_lea.sflag [#allocation3], %s375_s26  ;;  %s2227_s21 = sshra.s32 %s387_s7, 4  ;;  %s2228_s21 = int_to_ptr.hbm [resolvable:$true] %s2227_s21 }
  0x2a   : > { %s2229_s19 = scalar_lea.hbm %s2228_s21, 16  ;;  %p2231_p9 = pneg %p2500_p7 }
  0x2b   : > { %p2230_p8 = scmp.ne.s32.totalorder %s2228_s21, %s2229_s19  ;;  %s2234_s23 = scalar_lea.hbm %s3179_s0, 32 }
  0x2c   : > { %p2235_p11 = scmp.lt.s32.totalorder %s2228_s21, %s3179_s0  ;;  %p2236_p0 = scmp.lt.s32.totalorder %s2234_s23, %s2229_s19 }
  0x2d   : > { %p2232_p10 = pnand %p2231_p9, %p2230_p8 }
  0x2e   : > { %p2237_p2 = por %p2236_p0, %p2235_p11 }
  0x2f   : > { %p2233_p13 = pneg %p2232_p10 }
  0x31   : > { %p2238_p4 = pnand %p2237_p2, %p2233_p13 }
  0x33   : > { %2241 = shalt.err (!%p2238_p4)
}
  0x34   : > { %1908 = dma.hbm_to_vmem [thread:$0]  (!%p2500_p7), %s387_s7, 256, %s389_s5, %s376_s9  }
  0x35   : > { %397 = sbr.rel (%p2428_p3) target bundleno = 1738 (0x6ca), region = 64  ;;  %s2517_s26 = sand.u32 (!%p2428_p3), 1, %s2323_s18  }
  0x36   : > { %s1779_s15 = sshll.u32 (!%p2428_p3), %s2517_s26, 4  ;;  %s400_s16 = scalar_lea.sflag (!%p2428_p3), [#allocation3], %s2517_s26 }
  0x37   : > { %s2523_s19 = scalar_lea.vmem (!%p2428_p3), [#allocation2], %s1779_s15 }
  0x3a   : > { %2302 = dma.done.wait (%p2479_p12), %s400_s16, 256  }
  0x3b   : > { %2304 = vsyncadd (%p2479_p12), %s400_s16, 4294967040 }
  0x3c   : > { %2306 = dma.done.wait (%p50_p1), [#allocation6], 256  }
  0x3d   : > { %2308 = vsyncadd (%p50_p1), [#allocation6], 4294967040 }
  0x3e   : > { %2310 = dma.done.wait (%p50_p1), [#allocation9], 256  }
  0x3f   : > { %2312 = vsyncadd (%p50_p1), [#allocation9], 4294967040  ;;  %v463_v0 = vld [vmem:[%s2523_s19] sm:$0xff]  ;;  %v464_v1 = vld [vmem:[%s2523_s19 + $0x8] sm:$0xff]  ;;  %v2337_v3 = vmov 2048.0   ;;  %v2338_v38 = vmov 0  }
  0x40   : > { %v465_v2 = vadd.f32 %v464_v1, %v463_v0  ;;  %1965 = vrcp.f32 %v2337_v3  ;;  %1962 = vset.pattern.permute.xlu1 %v2338_v38  ;;  %v584_v39 = vld [vmem:[%s3185_s6] sm:$0xff]  ;;  %v525_v44 = vld [vmem:[%s3180_s1 + $0x8] sm:$0xff]  ;;  %vm539_vm4 = vcmask 64512   ;;  %s1863_s22 = sshll.u32 %s2423_s24, 4  ;;  %s2277_s13 = scalar_lea.hbm %s3190_s11, 32 }
  0x41   : > { %587 = vperm.xlu1 %1962, %v584_v39   ;;  %v533_v40 = vld [vmem:[%s3183_s4] sm:$0xff]  ;;  %v529_v48 = vld [vmem:[%s3181_s2 + $0x8] sm:$0xff] }
  0x42   : > { %466 = vadd.xlane.f32.xlu0 %v465_v2  ;;  %v1590_v41 = vld [vmem:[%s3189_s10] sm:$0xff]  ;;  %v583_v54 = vld [vmem:[#allocation7] sm:$0xff] }
  0x43   : > { %v524_v43 = vld [vmem:[%s3180_s1] sm:$0xff] }
  0x44   : > { %v528_v47 = vld [vmem:[%s3181_s2] sm:$0xff] }
  0x45   : > { %v532_v53 = vld [vmem:[#allocation5] sm:$0xff] }
  0x46   : > { %v1966_v4 = vpop.eup %1965 }
  0x47   : > { %v476_v5 = vmul.f32 2048.0, %v1966_v4  ;;  %vm480_vm0 = vweird.f32 %v1966_v4 }
  0x49   : > { %v477_v6 = vsub.f32 1.0, %v476_v5  ;;  %536 = vperm.xlu1 %1962, %v533_v40  }
  0x4b   : > { %v478_v10 = vmul.f32 %v1966_v4, %v477_v6 }
  0x4d   : > { %v479_v13 = vadd.f32 %v1966_v4, %v478_v10 }
  0x4f   : > { %v481_v16 = vsel %vm480_vm0, %v1966_v4, %v479_v13 }
  0x51   : > { %1593 = vperm.xlu1 %1962, %v1590_v41  }
  0xb3   : > { %v588_v55 = vpop.permute.xlu1 %587 }
  0xb5   : > { %v467_v7 = vpop.xlane.xlu0 %466 }
  0xb6   : > { %v468_v8 = vrot.slane %v467_v7, 4 }
  0xb8   : > { %v469_v9 = vadd.f32 %v468_v8, %v467_v7 }
  0xba   : > { %v470_v11 = vrot.slane %v469_v9, 2 }
  0xbb   : > { %v537_v56 = vpop.permute.xlu1 %536 }
  0xbc   : > { %v471_v12 = vadd.f32 %v470_v11, %v469_v9 }
  0xbe   : > { %v472_v14 = vrot.slane %v471_v12, 1 }
  0xc0   : > { %v473_v15 = vadd.f32 %v472_v14, %v471_v12 }
  0xc2   : > { %1864 = vpush %v473_v15 }
  0xc3   : > { %1866 = vpush %v481_v16 }
  0xf3   : > { %s1865_s5 = spop %1864 }
  0xf4   : > { %s1867_s7 = spop %1866 }
  0xf5   : > { %s483_s9 = smul.f32 %s1867_s7, %s1865_s5 }
  0xf7   : > { %v484_v17 = vstv %s483_s9 }
  0xf8   : > { %v485_v18 = vsub.f32 %v463_v0, %v484_v17  ;;  %v486_v19 = vsub.f32 %v464_v1, %v484_v17 }
  0xfa   : > { %v487_v20 = vmul.f32 %v485_v18, %v485_v18  ;;  %v488_v21 = vmul.f32 %v486_v19, %v486_v19 }
  0xfc   : > { %v489_v22 = vadd.f32 %v488_v21, %v487_v20 }
  0xfe   : > { %490 = vadd.xlane.f32.xlu0 %v489_v22 }
 0x171   : > { %v491_v23 = vpop.xlane.xlu0 %490 }
 0x172   : > { %v492_v24 = vrot.slane %v491_v23, 4 }
 0x174   : > { %v493_v25 = vadd.f32 %v492_v24, %v491_v23  ;;  %v633_v23 = vld [vmem:[#allocation8] sm:$0xff] }
 0x176   : > { %v494_v26 = vrot.slane %v493_v25, 2 }
 0x178   : > { %v495_v27 = vadd.f32 %v494_v26, %v493_v25 }
 0x17a   : > { %v496_v28 = vrot.slane %v495_v27, 1 }
 0x17c   : > { %v497_v29 = vadd.f32 %v496_v28, %v495_v27 }
 0x17e   : > { %1868 = vpush %v497_v29 }
 0x1af   : > { %s1869_s25 = spop %1868 }
 0x1b0   : > { %s507_s21 = smul.f32 %s1869_s25, %s1867_s7  ;;  %s1655_s7 = scalar_lea.hbm %s3190_s11, %s1863_s22 }
 0x1b1   : > { %s1659_s25 = sshll.u32 %s1655_s7, 4  ;;  %s1660_s25 = int_to_ptr.hbm [resolvable:$true] %s1659_s25 }
 0x1b2   : > { %s508_s12 = sadd.f32 1e-05, %s507_s21  ;;  %s1644_s21 = scalar_lea.sflag [#allocation4], %s2517_s26 }
 0x1b4   : > { %v509_v30 = vstv %s508_s12  ;;  %s2271_s12 = sshra.s32 %s1660_s25, 4  ;;  %s2272_s12 = int_to_ptr.hbm [resolvable:$true] %s2271_s12 }
 0x1b5   : > { %1967 = vrsqrt.f32 %v509_v30  ;;  %vm516_vm2 = vweird.f32 %v509_v30  ;;  %p2278_p12 = scmp.lt.s32.totalorder %s2272_s12, %s3190_s11 }
 0x1bb   : > { %v1968_v31 = vpop.eup %1967 }
 0x1bc   : > { %v511_v32 = vmul.f32 %v1968_v31, %v509_v30  ;;  %vm517_vm1 = vweird.f32 %v1968_v31 }
 0x1bd   : > { %vm518_vm3 = vmor %vm516_vm2, %vm517_vm1 }
 0x1be   : > { %v512_v33 = vmul.f32 %v1968_v31, %v511_v32  ;;  %v634_v32 = vld [vmem:[%s3187_s8] sm:$0xff] }
 0x1c0   : > { %v513_v34 = vmul.f32 0.5, %v512_v33 }
 0x1c2   : > { %v514_v35 = vsub.f32 1.5, %v513_v34 }
 0x1c4   : > { %v515_v36 = vmul.f32 %v1968_v31, %v514_v35 }
 0x1c6   : > { %v519_v37 = vsel %vm518_vm3, %v1968_v31, %v515_v36 }
 0x1c7   : > { %1870 = vpush %v519_v37 }
 0x1f8   : > { %s1871_s27 = spop %1870 }
 0x1f9   : > { %v521_v42 = vstv %s1871_s27  ;;  %s462_s27 = scalar_lea.vmem [#allocation11], %s1779_s15  ;;  %s2273_s15 = scalar_lea.hbm %s2272_s12, 16 }
 0x1fa   : > { %v522_v45 = vmul.f32 %v521_v42, %v485_v18  ;;  %v523_v46 = vmul.f32 %v521_v42, %v486_v19  ;;  %s1657_s9 = sshll.u32 %s462_s27, 4  ;;  %p2274_p1 = scmp.ne.s32.totalorder %s2272_s12, %s2273_s15  ;;  %s1658_s9 = int_to_ptr.vmem [resolvable:$true] %s1657_s9 }
 0x1fb   : > { %p2279_p7 = scmp.lt.s32.totalorder %s2277_s13, %s2273_s15 }
 0x1fc   : > { %v526_v49 = vmul.f32 %v524_v43, %v522_v45  ;;  %v527_v50 = vmul.f32 %v525_v44, %v523_v46  ;;  %p2275_p3 = pnand %p2274_p1, %p2486_p5 }
 0x1fd   : > { %p2280_p8 = por %p2279_p7, %p2278_p12 }
 0x1fe   : > { %v530_v51 = vadd.f32 %v528_v47, %v526_v49  ;;  %v531_v52 = vadd.f32 %v529_v48, %v527_v50  ;;  %p2276_p4 = pneg %p2275_p3 }
 0x200   : > { %558 = vmatpush.msra.mxu2 %v530_v51  ;;  %578 = vmatpush.msra.mxu3 %v531_v52  ;;  %p2281_p9 = pnand %p2280_p8, %p2276_p4 }
 0x201   : > { %658 = vmatpush.msra.mxu0 %v530_v51  ;;  %678 = vmatpush.msra.mxu1 %v531_v52 }
 0x202   : > { %1785 = vmatmul.msk.f32.vlgmr.msra.gmra.mxu2 %vm539_vm4, %v532_v53  ;;  %1786 = vmatmul.msk.f32.vlgmr.msra.gmra.mxu3 %vm539_vm4, %v532_v53 }
 0x203   : > { %608 = vmatpush.msrb.mxu2 %v530_v51  ;;  %628 = vmatpush.msrb.mxu3 %v531_v52 }
 0x204   : > { %1789 = vmatmul.msk.f32.vlgmr.msra.gmra.mxu0 %vm539_vm4, %v633_v23  ;;  %1790 = vmatmul.msk.f32.vlgmr.msra.gmra.mxu1 %vm539_vm4, %v633_v23 }
 0x20a   : > { %1787 = vmatmul.msk.f32.vlgmr.msrb.gmra.mxu2 %vm539_vm4, %v583_v54  ;;  %1788 = vmatmul.msk.f32.vlgmr.msrb.gmra.mxu3 %vm539_vm4, %v583_v54 }
 0x285   : > { %v560_v57 = vpop.f32.mrf.mxu2  ;;  %v580_v58 = vpop.f32.mrf.mxu3 }
 0x286   : > { %v2564_v59 = vadd.f32 %v560_v57, %v537_v56  ;;  %v2566_v60 = vadd.f32 %v580_v58, %v537_v56 }
 0x288   : > { %778 = vmatpush.msra.mxu2 %v2564_v59  ;;  %843 = vmatpush.msra.mxu3 %v2566_v60 }
 0x28d   : > { %v610_v61 = vpop.f32.mrf.mxu2  ;;  %v630_v62 = vpop.f32.mrf.mxu3 }
 0x28e   : > { %v631_v63 = vadd.f32 %v630_v62, %v588_v55  ;;  %v611_v0 = vadd.f32 %v610_v61, %v588_v55 }
 0x290   : > { %1113 = vxpose.xlu0.b32.start.end [1/1] (short) %v631_v63, 128  ;;  %683 = vxpose.xlu2.b32.start.end [1/1] (short) %v611_v0, 128 }
 0x2f2   : > { %1963 = vset.pattern.permute.xlu2 %v2338_v38 }
 0x2f7   : > { %1964 = vset.pattern.permute.xlu0 %v2338_v38 }
 0x329   : > { %v699_v1 = vpop.trf.xlu2 }
 0x32a   : > { %1791 = vmatmul.msk.f32.vlgmr.msra.gmra.mxu2 %vm539_vm4, %v699_v1  ;;  %1807 = vmatmul.msk.f32.vlgmr.msra.gmra.mxu3 %vm539_vm4, %v699_v1 }
 0x331   : > { %v700_v2 = vpop.trf.xlu2 }
 0x332   : > { %1792 = vmatmul.msk.f32.gmra.mxu2 %vm539_vm4, %v700_v2  ;;  %1808 = vmatmul.msk.f32.gmra.mxu3 %vm539_vm4, %v700_v2 }
 0x339   : > { %v701_v3 = vpop.trf.xlu2 }
 0x33a   : > { %1793 = vmatmul.msk.f32.gmra.mxu2 %vm539_vm4, %v701_v3  ;;  %1809 = vmatmul.msk.f32.gmra.mxu3 %vm539_vm4, %v701_v3 }
 0x341   : > { %v702_v4 = vpop.trf.xlu2 }
 0x342   : > { %1794 = vmatmul.msk.f32.gmra.mxu2 %vm539_vm4, %v702_v4  ;;  %1810 = vmatmul.msk.f32.gmra.mxu3 %vm539_vm4, %v702_v4 }
 0x349   : > { %v703_v5 = vpop.trf.xlu2 }
 0x34a   : > { %1795 = vmatmul.msk.f32.gmra.mxu2 %vm539_vm4, %v703_v5  ;;  %1811 = vmatmul.msk.f32.gmra.mxu3 %vm539_vm4, %v703_v5 }
 0x351   : > { %v704_v6 = vpop.trf.xlu2 }
 0x352   : > { %1796 = vmatmul.msk.f32.gmra.mxu2 %vm539_vm4, %v704_v6  ;;  %1812 = vmatmul.msk.f32.gmra.mxu3 %vm539_vm4, %v704_v6 }
 0x359   : > { %v705_v7 = vpop.trf.xlu2 }
 0x35a   : > { %1797 = vmatmul.msk.f32.gmra.mxu2 %vm539_vm4, %v705_v7  ;;  %1813 = vmatmul.msk.f32.gmra.mxu3 %vm539_vm4, %v705_v7 }
 0x361   : > { %v706_v8 = vpop.trf.xlu2 }
 0x362   : > { %1798 = vmatmul.msk.f32.gmra.mxu2 %vm539_vm4, %v706_v8  ;;  %1814 = vmatmul.msk.f32.gmra.mxu3 %vm539_vm4, %v706_v8 }
 0x369   : > { %v707_v9 = vpop.trf.xlu2 }
 0x36a   : > { %1799 = vmatmul.msk.f32.gmra.mxu2 %vm539_vm4, %v707_v9  ;;  %1815 = vmatmul.msk.f32.gmra.mxu3 %vm539_vm4, %v707_v9 }
 0x371   : > { %v708_v10 = vpop.trf.xlu2  ;;  %637 = vperm.xlu2 %1963, %v634_v32  }
 0x372   : > { %1800 = vmatmul.msk.f32.gmra.mxu2 %vm539_vm4, %v708_v10  ;;  %1816 = vmatmul.msk.f32.gmra.mxu3 %vm539_vm4, %v708_v10 }
 0x379   : > { %v709_v11 = vpop.trf.xlu2 }
 0x37a   : > { %1801 = vmatmul.msk.f32.gmra.mxu2 %vm539_vm4, %v709_v11  ;;  %1817 = vmatmul.msk.f32.gmra.mxu3 %vm539_vm4, %v709_v11 }
 0x381   : > { %v710_v12 = vpop.trf.xlu2 }
 0x382   : > { %1802 = vmatmul.msk.f32.gmra.mxu2 %vm539_vm4, %v710_v12  ;;  %1818 = vmatmul.msk.f32.gmra.mxu3 %vm539_vm4, %v710_v12 }
 0x389   : > { %v711_v13 = vpop.trf.xlu2 }
 0x38a   : > { %1803 = vmatmul.msk.f32.gmra.mxu2 %vm539_vm4, %v711_v13  ;;  %1819 = vmatmul.msk.f32.gmra.mxu3 %vm539_vm4, %v711_v13 }
 0x391   : > { %v712_v14 = vpop.trf.xlu2 }
 0x392   : > { %1804 = vmatmul.msk.f32.gmra.mxu2 %vm539_vm4, %v712_v14  ;;  %1820 = vmatmul.msk.f32.gmra.mxu3 %vm539_vm4, %v712_v14 }
 0x399   : > { %v713_v15 = vpop.trf.xlu2 }
 0x39a   : > { %1805 = vmatmul.msk.f32.gmra.mxu2 %vm539_vm4, %v713_v15  ;;  %1821 = vmatmul.msk.f32.gmra.mxu3 %vm539_vm4, %v713_v15 }
 0x3a1   : > { %v714_v16 = vpop.trf.xlu2 }
 0x3a2   : > { %1806 = vmatmul.msk.f32.gmra.mxu2 %vm539_vm4, %v714_v16  ;;  %1822 = vmatmul.msk.f32.gmra.mxu3 %vm539_vm4, %v714_v16 }
 0x3ad   : > { %v2602_v17 = vpop.f32.mrf.mxu2  ;;  %v2604_v18 = vpop.f32.mrf.mxu3 }
 0x3b5   : > { %v2606_v19 = vpop.f32.mrf.mxu2  ;;  %v2608_v20 = vpop.f32.mrf.mxu3 }
 0x3bd   : > { %v2610_v21 = vpop.f32.mrf.mxu2  ;;  %v2612_v22 = vpop.f32.mrf.mxu3 }
 0x3be   : > { %v893_v47 = vmax.f32 %v2602_v17, %v2610_v21  ;;  %v914_v48 = vmax.f32 %v2604_v18, %v2612_v22 }
 0x3c5   : > { %v2616_v24 = vpop.f32.mrf.mxu2  ;;  %v2618_v25 = vpop.f32.mrf.mxu3 }
 0x3c6   : > { %v894_v49 = vmax.f32 %v2606_v19, %v2616_v24  ;;  %v915_v50 = vmax.f32 %v2608_v20, %v2618_v25 }
 0x3cd   : > { %v2620_v26 = vpop.f32.mrf.mxu2  ;;  %v2622_v27 = vpop.f32.mrf.mxu3 }
 0x3ce   : > { %v895_v51 = vmax.f32 %v893_v47, %v2620_v26  ;;  %v916_v52 = vmax.f32 %v914_v48, %v2622_v27 }
 0x3d5   : > { %v2624_v28 = vpop.f32.mrf.mxu2  ;;  %v2626_v29 = vpop.f32.mrf.mxu3 }
 0x3d6   : > { %v896_v53 = vmax.f32 %v894_v49, %v2624_v28  ;;  %v917_v54 = vmax.f32 %v915_v50, %v2626_v29 }
 0x3dd   : > { %v2628_v30 = vpop.f32.mrf.mxu2  ;;  %v2630_v31 = vpop.f32.mrf.mxu3 }
 0x3de   : > { %v897_v57 = vmax.f32 %v895_v51, %v2628_v30  ;;  %v918_v58 = vmax.f32 %v916_v52, %v2630_v31 }
 0x3e5   : > { %v2635_v33 = vpop.f32.mrf.mxu2  ;;  %v2637_v34 = vpop.f32.mrf.mxu3 }
 0x3e6   : > { %v898_v61 = vmax.f32 %v896_v53, %v2635_v33  ;;  %v919_v62 = vmax.f32 %v917_v54, %v2637_v34 }
 0x3ed   : > { %v2639_v35 = vpop.f32.mrf.mxu2  ;;  %v2641_v36 = vpop.f32.mrf.mxu3 }
 0x3ee   : > { %v899_v63 = vmax.f32 %v897_v57, %v2639_v35  ;;  %v920_v0 = vmax.f32 %v918_v58, %v2641_v36 }
 0x3f5   : > { %v2643_v37 = vpop.f32.mrf.mxu2  ;;  %v2645_v38 = vpop.f32.mrf.mxu3 }
 0x3f6   : > { %v900_v1 = vmax.f32 %v898_v61, %v2643_v37  ;;  %v921_v2 = vmax.f32 %v919_v62, %v2645_v38 }
 0x3fd   : > { %v2647_v39 = vpop.f32.mrf.mxu2  ;;  %v2649_v40 = vpop.f32.mrf.mxu3 }
 0x3fe   : > { %v901_v3 = vmax.f32 %v899_v63, %v2647_v39  ;;  %v922_v4 = vmax.f32 %v920_v0, %v2649_v40 }
 0x405   : > { %v2651_v41 = vpop.f32.mrf.mxu2  ;;  %v2653_v42 = vpop.f32.mrf.mxu3 }
 0x406   : > { %v902_v5 = vmax.f32 %v900_v1, %v2651_v41  ;;  %v923_v6 = vmax.f32 %v921_v2, %v2653_v42 }
 0x40d   : > { %v2655_v43 = vpop.f32.mrf.mxu2  ;;  %v2657_v44 = vpop.f32.mrf.mxu3 }
 0x40e   : > { %v903_v7 = vmax.f32 %v901_v3, %v2655_v43  ;;  %v924_v8 = vmax.f32 %v922_v4, %v2657_v44 }
 0x415   : > { %v819_v45 = vpop.f32.mrf.mxu2  ;;  %v2659_v46 = vpop.f32.mrf.mxu3 }
 0x416   : > { %v904_v9 = vmax.f32 %v902_v5, %v819_v45  ;;  %v925_v10 = vmax.f32 %v923_v6, %v2659_v46 }
 0x41d   : > { %v822_v55 = vpop.f32.mrf.mxu2  ;;  %v887_v56 = vpop.f32.mrf.mxu3 }
 0x41e   : > { %v905_v13 = vmax.f32 %v903_v7, %v822_v55  ;;  %v926_v14 = vmax.f32 %v924_v8, %v887_v56 }
 0x425   : > { %v825_v11 = vpop.f32.mrf.mxu2  ;;  %v890_v12 = vpop.f32.mrf.mxu3 }
 0x426   : > { %v906_v15 = vmax.f32 %v904_v9, %v825_v11  ;;  %v927_v16 = vmax.f32 %v925_v10, %v890_v12 }
 0x428   : > { %v907_v23 = vmax.f32 %v905_v13, %v906_v15  ;;  %v928_v32 = vmax.f32 %v926_v14, %v927_v16 }
 0x42a   : > { %v908_v47 = vrot.slane %v907_v23, 4  ;;  %v929_v48 = vrot.slane %v928_v32, 4 }
 0x42c   : > { %v909_v49 = vmax.f32 %v907_v23, %v908_v47  ;;  %v930_v50 = vmax.f32 %v928_v32, %v929_v48 }
 0x42e   : > { %v910_v51 = vrot.slane %v909_v49, 2  ;;  %v931_v52 = vrot.slane %v930_v50, 2 }
 0x430   : > { %v911_v53 = vmax.f32 %v909_v49, %v910_v51  ;;  %v932_v54 = vmax.f32 %v930_v50, %v931_v52 }
 0x432   : > { %v912_v57 = vrot.slane %v911_v53, 1  ;;  %v933_v58 = vrot.slane %v932_v54, 1 }
 0x434   : > { %v2688_v61 = vmax.f32 %v911_v53, %v912_v57  ;;  %v2690_v62 = vmax.f32 %v932_v54, %v933_v58 }
 0x436   : > { %v965_v63 = vsub.f32 %v825_v11, %v2688_v61  ;;  %v966_v0 = vsub.f32 %v890_v12, %v2690_v62  ;;  %v963_v1 = vsub.f32 %v822_v55, %v2688_v61  ;;  %v964_v2 = vsub.f32 %v887_v56, %v2690_v62 }
 0x437   : > { %v961_v3 = vsub.f32 %v819_v45, %v2688_v61  ;;  %v962_v4 = vsub.f32 %v2659_v46, %v2690_v62  ;;  %v959_v8 = vsub.f32 %v2655_v43, %v2688_v61  ;;  %v960_v10 = vsub.f32 %v2657_v44, %v2690_v62 }
 0x438   : > { %v1027_v5 = vmul.f32 1.442695, %v965_v63  ;;  %v1029_v6 = vmul.f32 1.442695, %v966_v0  ;;  %v1023_v7 = vmul.f32 1.442695, %v963_v1  ;;  %v957_v55 = vsub.f32 %v2651_v41, %v2688_v61 }
 0x439   : > { %v1025_v9 = vmul.f32 1.442695, %v964_v2  ;;  %v1019_v11 = vmul.f32 1.442695, %v961_v3  ;;  %v1021_v45 = vmul.f32 1.442695, %v962_v4  ;;  %v958_v46 = vsub.f32 %v2653_v42, %v2690_v62 }
 0x43a   : > { %1969 = vpow2.f32 %v1027_v5  ;;  %v1015_v56 = vmul.f32 1.442695, %v959_v8  ;;  %v955_v12 = vsub.f32 %v2647_v39, %v2688_v61  ;;  %v1017_v43 = vmul.f32 1.442695, %v960_v10 }
 0x43b   : > { %1971 = vpow2.f32 %v1029_v6  ;;  %v956_v44 = vsub.f32 %v2649_v40, %v2690_v62  ;;  %v1011_v13 = vmul.f32 1.442695, %v957_v55  ;;  %v953_v41 = vsub.f32 %v2643_v37, %v2688_v61 }
 0x43c   : > { %1973 = vpow2.f32 %v1023_v7  ;;  %v1013_v14 = vmul.f32 1.442695, %v958_v46  ;;  %v954_v42 = vsub.f32 %v2645_v38, %v2690_v62  ;;  %v1007_v16 = vmul.f32 1.442695, %v955_v12 }
 0x43d   : > { %1975 = vpow2.f32 %v1025_v9  ;;  %v951_v39 = vsub.f32 %v2639_v35, %v2688_v61  ;;  %v1009_v40 = vmul.f32 1.442695, %v956_v44  ;;  %v952_v37 = vsub.f32 %v2641_v36, %v2690_v62 }
 0x43e   : > { %1977 = vpow2.f32 %v1019_v11  ;;  %v1003_v38 = vmul.f32 1.442695, %v953_v41  ;;  %v949_v47 = vsub.f32 %v2635_v33, %v2688_v61  ;;  %v1005_v35 = vmul.f32 1.442695, %v954_v42 }
 0x43f   : > { %1979 = vpow2.f32 %v1021_v45  ;;  %v950_v49 = vsub.f32 %v2637_v34, %v2690_v62  ;;  %v999_v36 = vmul.f32 1.442695, %v951_v39  ;;  %v947_v51 = vsub.f32 %v2628_v30, %v2688_v61  ;;  %v1129_v39 = vpop.trf.xlu0 }
 0x440   : > { %v2715_v15 = vpop.eup %1969  ;;  %1981 = vpow2.f32 %v1015_v56  ;;  %v1001_v33 = vmul.f32 1.442695, %v952_v37  ;;  %v948_v53 = vsub.f32 %v2630_v31, %v2690_v62  ;;  %v995_v34 = vmul.f32 1.442695, %v949_v47 }
 0x441   : > { %v2719_v23 = vpop.eup %1971  ;;  %1073 = vmatpush.msrb.mxu0 %v2715_v15  ;;  %1983 = vpow2.f32 %v1017_v43  ;;  %v945_v57 = vsub.f32 %v2624_v28, %v2688_v61  ;;  %v997_v30 = vmul.f32 1.442695, %v950_v49  ;;  %v946_v63 = vsub.f32 %v2626_v29, %v2690_v62 }
 0x442   : > { %v2724_v32 = vpop.eup %1973  ;;  %1093 = vmatpush.msrb.mxu1 %v2719_v23  ;;  %1985 = vpow2.f32 %v1011_v13  ;;  %v991_v31 = vmul.f32 1.442695, %v947_v51  ;;  %v943_v1 = vsub.f32 %v2620_v26, %v2688_v61  ;;  %v993_v28 = vmul.f32 1.442695, %v948_v53  ;;  %v2805_v51 = vpop.permute.xlu2 %637 }
 0x443   : > { %v2729_v48 = vpop.eup %1975  ;;  %1074 = vmatpush.msrb.mxu0 %v2724_v32  ;;  %1987 = vpow2.f32 %v1013_v14  ;;  %v944_v3 = vsub.f32 %v2622_v27, %v2690_v62  ;;  %v987_v29 = vmul.f32 1.442695, %v945_v57  ;;  %v941_v5 = vsub.f32 %v2616_v24, %v2688_v61 }
 0x444   : > { %v2734_v50 = vpop.eup %1977  ;;  %1094 = vmatpush.msrb.mxu1 %v2729_v48  ;;  %1989 = vpow2.f32 %v1007_v16  ;;  %v989_v26 = vmul.f32 1.442695, %v946_v63  ;;  %v942_v7 = vsub.f32 %v2618_v25, %v2690_v62  ;;  %v983_v27 = vmul.f32 1.442695, %v943_v1 }
 0x445   : > { %v2739_v52 = vpop.eup %1979  ;;  %1075 = vmatpush.msrb.mxu0 %v2734_v50  ;;  %1991 = vpow2.f32 %v1009_v40  ;;  %v939_v9 = vsub.f32 %v2610_v21, %v2688_v61  ;;  %v985_v24 = vmul.f32 1.442695, %v944_v3  ;;  %v940_v11 = vsub.f32 %v2612_v22, %v2690_v62 }
 0x446   : > { %v2744_v54 = vpop.eup %1981  ;;  %1095 = vmatpush.msrb.mxu1 %v2739_v52  ;;  %1993 = vpow2.f32 %v1003_v38  ;;  %v979_v25 = vmul.f32 1.442695, %v941_v5  ;;  %v938_v45 = vsub.f32 %v2608_v20, %v2690_v62  ;;  %v981_v21 = vmul.f32 1.442695, %v942_v7 }
 0x447   : > { %v2749_v58 = vpop.eup %1983  ;;  %1076 = vmatpush.msrb.mxu0 %v2744_v54  ;;  %1995 = vpow2.f32 %v1005_v35  ;;  %v937_v56 = vsub.f32 %v2606_v19, %v2688_v61  ;;  %v975_v22 = vmul.f32 1.442695, %v939_v9  ;;  %v935_v43 = vsub.f32 %v2602_v17, %v2688_v61 }
 0x448   : > { %v2754_v0 = vpop.eup %1985  ;;  %1096 = vmatpush.msrb.mxu1 %v2749_v58  ;;  %1997 = vpow2.f32 %v999_v36  ;;  %v977_v20 = vmul.f32 1.442695, %v940_v11  ;;  %v936_v13 = vsub.f32 %v2604_v18, %v2690_v62  ;;  %v973_v19 = vmul.f32 1.442695, %v938_v45  ;;  %v660_v36 = vpop.f32.mrf.mxu0 }
 0x449   : > { %v2759_v2 = vpop.eup %1987  ;;  %1077 = vmatpush.msrb.mxu0 %v2754_v0  ;;  %1999 = vpow2.f32 %v1001_v33  ;;  %v971_v42 = vmul.f32 1.442695, %v937_v56  ;;  %v967_v17 = vmul.f32 1.442695, %v935_v43 }
 0x44a   : > { %v2764_v4 = vpop.eup %1989  ;;  %1097 = vmatpush.msrb.mxu1 %v2759_v2  ;;  %2001 = vpow2.f32 %v995_v34  ;;  %v969_v37 = vmul.f32 1.442695, %v936_v13  ;;  %v1130_v34 = vpop.trf.xlu0 }
 0x44b   : > { %v2769_v6 = vpop.eup %1991  ;;  %1078 = vmatpush.msrb.mxu0 %v2764_v4  ;;  %2003 = vpow2.f32 %v997_v30  ;;  %v661_v30 = vadd.f32 %v660_v36, %v2805_v51 }
 0x44c   : > { %v2774_v8 = vpop.eup %1993  ;;  %1098 = vmatpush.msrb.mxu1 %v2769_v6  ;;  %2005 = vpow2.f32 %v991_v31 }
 0x44d   : > { %v2779_v10 = vpop.eup %1995  ;;  %1079 = vmatpush.msrb.mxu0 %v2774_v8  ;;  %2007 = vpow2.f32 %v993_v28 }
 0x44e   : > { %v2784_v55 = vpop.eup %1997  ;;  %1099 = vmatpush.msrb.mxu1 %v2779_v10  ;;  %2009 = vpow2.f32 %v987_v29 }
 0x44f   : > { %v2789_v46 = vpop.eup %1999  ;;  %1080 = vmatpush.msrb.mxu0 %v2784_v55  ;;  %2011 = vpow2.f32 %v989_v26 }
 0x450   : > { %v2794_v12 = vpop.eup %2001  ;;  %1100 = vmatpush.msrb.mxu1 %v2789_v46  ;;  %2013 = vpow2.f32 %v983_v27 }
 0x451   : > { %v2799_v44 = vpop.eup %2003  ;;  %1081 = vmatpush.msrb.mxu0 %v2794_v12  ;;  %2015 = vpow2.f32 %v985_v24 }
 0x452   : > { %v2006_v41 = vpop.eup %2005  ;;  %1101 = vmatpush.msrb.mxu1 %v2799_v44  ;;  %2017 = vpow2.f32 %v979_v25  ;;  %v1131_v7 = vpop.trf.xlu0 }
 0x453   : > { %v2008_v14 = vpop.eup %2007  ;;  %1082 = vmatpush.msrb.mxu0 %v2006_v41  ;;  %2019 = vpow2.f32 %v981_v21 }
 0x454   : > { %v2010_v16 = vpop.eup %2009  ;;  %1102 = vmatpush.msrb.mxu1 %v2008_v14  ;;  %2021 = vpow2.f32 %v975_v22 }
 0x455   : > { %v2012_v40 = vpop.eup %2011  ;;  %1083 = vmatpush.msrb.mxu0 %v2010_v16  ;;  %2023 = vpow2.f32 %v977_v20 }
 0x456   : > { %v2014_v38 = vpop.eup %2013  ;;  %1103 = vmatpush.msrb.mxu1 %v2012_v40  ;;  %2025 = vpow2.f32 %v973_v19 }
 0x457   : > { %v2016_v18 = vpop.eup %2015  ;;  %1084 = vmatpush.msrb.mxu0 %v2014_v38  ;;  %2027 = vpow2.f32 %v971_v42 }
 0x458   : > { %v2018_v47 = vpop.eup %2017  ;;  %1104 = vmatpush.msrb.mxu1 %v2016_v18  ;;  %2029 = vpow2.f32 %v967_v17 }
 0x459   : > { %v2020_v35 = vpop.eup %2019  ;;  %1085 = vmatpush.msrb.mxu0 %v2018_v47  ;;  %2031 = vpow2.f32 %v969_v37 }
 0x45a   : > { %v2022_v49 = vpop.eup %2021  ;;  %1105 = vmatpush.msrb.mxu1 %v2020_v35 }
 0x45b   : > { %v2024_v33 = vpop.eup %2023  ;;  %1086 = vmatpush.msrb.mxu0 %v2022_v49 }
 0x45c   : > { %v2026_v53 = vpop.eup %2025  ;;  %1106 = vmatpush.msrb.mxu1 %v2024_v33 }
 0x45d   : > { %v2028_v57 = vpop.eup %2027 }
 0x45e   : > { %v2030_v63 = vpop.eup %2029  ;;  %1107 = vmatpush.msrb.mxu1 %v2026_v53  ;;  %1087 = vmatpush.msrb.mxu0 %v2028_v57 }
 0x45f   : > { %v2032_v31 = vpop.eup %2031  ;;  %v1031_v1 = vadd.f32 %v2030_v63, %v2028_v57 }
 0x460   : > { %1088 = vmatpush.msrb.mxu0 %v2030_v63  ;;  %v1052_v28 = vadd.f32 %v2032_v31, %v2026_v53  ;;  %1108 = vmatpush.msrb.mxu1 %v2032_v31 }
 0x461   : > { %v1032_v3 = vadd.f32 %v2022_v49, %v1031_v1  ;;  %1089 = vmatmul.f32.vlgmr.msrb.gmra.mxu0 %v661_v30  ;;  %1109 = vmatmul.f32.vlgmr.msrb.gmra.mxu1 %v661_v30 }
 0x462   : > { %v1053_v29 = vadd.f32 %v2024_v33, %v1052_v28  ;;  %1208 = vmatpush.msra.mxu0 %v2564_v59  ;;  %1273 = vmatpush.msra.mxu1 %v2566_v60  ;;  %v1132_v59 = vpop.trf.xlu0 }
 0x463   : > { %v1033_v5 = vadd.f32 %v2018_v47, %v1032_v3 }
 0x464   : > { %v1054_v26 = vadd.f32 %v2020_v35, %v1053_v29 }
 0x465   : > { %v1034_v27 = vadd.f32 %v2014_v38, %v1033_v5 }
 0x466   : > { %v1055_v9 = vadd.f32 %v2016_v18, %v1054_v26 }
 0x467   : > { %v1035_v24 = vadd.f32 %v2010_v16, %v1034_v27  ;;  %v2860_v16 = vpop.f32.mrf.mxu1 }
 0x468   : > { %v1056_v11 = vadd.f32 %v2012_v40, %v1055_v9 }
 0x469   : > { %v1036_v25 = vadd.f32 %v2006_v41, %v1035_v24  ;;  %1823 = vmatmul.msk.f32.vlgmr.msra.gmra.mxu0 %vm539_vm4, %v1129_v39  ;;  %1839 = vmatmul.msk.f32.vlgmr.msra.gmra.mxu1 %vm539_vm4, %v1129_v39 }
 0x46a   : > { %v1057_v45 = vadd.f32 %v2008_v14, %v1056_v11  ;;  %v1133_v19 = vpop.trf.xlu0 }
 0x46b   : > { %v1037_v21 = vadd.f32 %v2794_v12, %v1036_v25 }
 0x46c   : > { %v1058_v56 = vadd.f32 %v2799_v44, %v1057_v45 }
 0x46d   : > { %v1038_v60 = vadd.f32 %v2784_v55, %v1037_v21 }
 0x46e   : > { %v1059_v22 = vadd.f32 %v2789_v46, %v1058_v56 }
 0x46f   : > { %v1039_v43 = vadd.f32 %v2774_v8, %v1038_v60 }
 0x470   : > { %v1060_v20 = vadd.f32 %v2779_v10, %v1059_v22 }
 0x471   : > { %v1040_v13 = vadd.f32 %v2764_v4, %v1039_v43  ;;  %1824 = vmatmul.msk.f32.gmra.mxu0 %vm539_vm4, %v1130_v34  ;;  %1840 = vmatmul.msk.f32.gmra.mxu1 %vm539_vm4, %v1130_v34 }
 0x472   : > { %v1061_v41 = vadd.f32 %v2769_v6, %v1060_v20 }
 0x473   : > { %v1041_v12 = vadd.f32 %v2754_v0, %v1040_v13 }
 0x474   : > { %v1062_v44 = vadd.f32 %v2759_v2, %v1061_v41  ;;  %v1134_v2 = vpop.trf.xlu0 }
 0x475   : > { %v1042_v55 = vadd.f32 %v2744_v54, %v1041_v12 }
 0x476   : > { %v1063_v46 = vadd.f32 %v2749_v58, %v1062_v44 }
 0x477   : > { %v1043_v8 = vadd.f32 %v2734_v50, %v1042_v55 }
 0x478   : > { %v1064_v10 = vadd.f32 %v2739_v52, %v1063_v46 }
 0x479   : > { %1825 = vmatmul.msk.f32.gmra.mxu0 %vm539_vm4, %v1131_v7  ;;  %1841 = vmatmul.msk.f32.gmra.mxu1 %vm539_vm4, %v1131_v7  ;;  %v1044_v4 = vadd.f32 %v2724_v32, %v1043_v8 }
 0x47a   : > { %v1065_v6 = vadd.f32 %v2729_v48, %v1064_v10 }
 0x47b   : > { %v2833_v0 = vadd.f32 %v2715_v15, %v1044_v4 }
 0x47c   : > { %v2836_v54 = vadd.f32 %v2719_v23, %v1065_v6  ;;  %v1135_v50 = vpop.trf.xlu0 }
 0x481   : > { %1826 = vmatmul.msk.f32.gmra.mxu0 %vm539_vm4, %v1132_v59  ;;  %1842 = vmatmul.msk.f32.gmra.mxu1 %vm539_vm4, %v1132_v59 }
 0x484   : > { %v1136_v52 = vpop.trf.xlu0 }
 0x489   : > { %1827 = vmatmul.msk.f32.gmra.mxu0 %vm539_vm4, %v1133_v19  ;;  %1843 = vmatmul.msk.f32.gmra.mxu1 %vm539_vm4, %v1133_v19 }
 0x48c   : > { %v1137_v15 = vpop.trf.xlu0 }
 0x491   : > { %1828 = vmatmul.msk.f32.gmra.mxu0 %vm539_vm4, %v1134_v2  ;;  %1844 = vmatmul.msk.f32.gmra.mxu1 %vm539_vm4, %v1134_v2 }
 0x494   : > { %v1138_v23 = vpop.trf.xlu0 }
 0x499   : > { %1829 = vmatmul.msk.f32.gmra.mxu0 %vm539_vm4, %v1135_v50  ;;  %1845 = vmatmul.msk.f32.gmra.mxu1 %vm539_vm4, %v1135_v50 }
 0x49c   : > { %v1139_v32 = vpop.trf.xlu0 }
 0x4a1   : > { %1830 = vmatmul.msk.f32.gmra.mxu0 %vm539_vm4, %v1136_v52  ;;  %1846 = vmatmul.msk.f32.gmra.mxu1 %vm539_vm4, %v1136_v52 }
 0x4a4   : > { %v1140_v48 = vpop.trf.xlu0 }
 0x4a9   : > { %1831 = vmatmul.msk.f32.gmra.mxu0 %vm539_vm4, %v1137_v15  ;;  %1847 = vmatmul.msk.f32.gmra.mxu1 %vm539_vm4, %v1137_v15 }
 0x4ac   : > { %v1141_v58 = vpop.trf.xlu0 }
 0x4b1   : > { %1832 = vmatmul.msk.f32.gmra.mxu0 %vm539_vm4, %v1138_v23  ;;  %1848 = vmatmul.msk.f32.gmra.mxu1 %vm539_vm4, %v1138_v23 }
 0x4b4   : > { %v1142_v14 = vpop.trf.xlu0 }
 0x4b9   : > { %1833 = vmatmul.msk.f32.gmra.mxu0 %vm539_vm4, %v1139_v32  ;;  %1849 = vmatmul.msk.f32.gmra.mxu1 %vm539_vm4, %v1139_v32 }
 0x4bc   : > { %v1143_v42 = vpop.trf.xlu0 }
 0x4c1   : > { %1834 = vmatmul.msk.f32.gmra.mxu0 %vm539_vm4, %v1140_v48  ;;  %1850 = vmatmul.msk.f32.gmra.mxu1 %vm539_vm4, %v1140_v48 }
 0x4c4   : > { %v1144_v17 = vpop.trf.xlu0 }
 0x4c9   : > { %1835 = vmatmul.msk.f32.gmra.mxu0 %vm539_vm4, %v1141_v58  ;;  %1851 = vmatmul.msk.f32.gmra.mxu1 %vm539_vm4, %v1141_v58 }
 0x4d1   : > { %1836 = vmatmul.msk.f32.gmra.mxu0 %vm539_vm4, %v1142_v14  ;;  %1852 = vmatmul.msk.f32.gmra.mxu1 %vm539_vm4, %v1142_v14 }
 0x4d9   : > { %1837 = vmatmul.msk.f32.gmra.mxu0 %vm539_vm4, %v1143_v42  ;;  %1853 = vmatmul.msk.f32.gmra.mxu1 %vm539_vm4, %v1143_v42 }
 0x4de   : > { %v2864_v39 = vpop.f32.mrf.mxu0  ;;  %v2866_v40 = vpop.f32.mrf.mxu1 }
 0x4e1   : > { %1838 = vmatmul.msk.f32.gmra.mxu0 %vm539_vm4, %v1144_v17  ;;  %1854 = vmatmul.msk.f32.gmra.mxu1 %vm539_vm4, %v1144_v17 }
 0x4e6   : > { %v2870_v37 = vpop.f32.mrf.mxu0  ;;  %v2872_v38 = vpop.f32.mrf.mxu1 }
 0x4ee   : > { %v2874_v18 = vpop.f32.mrf.mxu0  ;;  %v2876_v47 = vpop.f32.mrf.mxu1 }
 0x4f6   : > { %v2878_v35 = vpop.f32.mrf.mxu0  ;;  %v2880_v49 = vpop.f32.mrf.mxu1 }
 0x4f7   : > { %v1323_v56 = vmax.f32 %v2870_v37, %v2878_v35  ;;  %v1344_v59 = vmax.f32 %v2872_v38, %v2880_v49 }
 0x4fe   : > { %v2882_v36 = vpop.f32.mrf.mxu0  ;;  %v2884_v33 = vpop.f32.mrf.mxu1 }
 0x4ff   : > { %v1324_v60 = vmax.f32 %v2874_v18, %v2882_v36  ;;  %v1345_v22 = vmax.f32 %v2876_v47, %v2884_v33 }
 0x506   : > { %v2886_v53 = vpop.f32.mrf.mxu0  ;;  %v2888_v34 = vpop.f32.mrf.mxu1 }
 0x507   : > { %v1325_v43 = vmax.f32 %v1323_v56, %v2886_v53  ;;  %v1346_v20 = vmax.f32 %v1344_v59, %v2888_v34 }
 0x50e   : > { %v2890_v57 = vpop.f32.mrf.mxu0  ;;  %v2892_v30 = vpop.f32.mrf.mxu1 }
 0x50f   : > { %v1326_v13 = vmax.f32 %v1324_v60, %v2890_v57  ;;  %v1347_v41 = vmax.f32 %v1345_v22, %v2892_v30 }
 0x516   : > { %v2894_v63 = vpop.f32.mrf.mxu0  ;;  %v2896_v31 = vpop.f32.mrf.mxu1 }
 0x517   : > { %v1327_v19 = vmax.f32 %v1325_v43, %v2894_v63  ;;  %v1348_v55 = vmax.f32 %v1346_v20, %v2896_v31 }
 0x51e   : > { %v2898_v1 = vpop.f32.mrf.mxu0  ;;  %v2900_v28 = vpop.f32.mrf.mxu1 }
 0x51f   : > { %v1328_v46 = vmax.f32 %v1326_v13, %v2898_v1  ;;  %v1349_v8 = vmax.f32 %v1347_v41, %v2900_v28 }
 0x526   : > { %v2902_v3 = vpop.f32.mrf.mxu0  ;;  %v2904_v29 = vpop.f32.mrf.mxu1 }
 0x527   : > { %v1329_v10 = vmax.f32 %v1327_v19, %v2902_v3  ;;  %v1350_v4 = vmax.f32 %v1348_v55, %v2904_v29 }
 0x52e   : > { %v2906_v5 = vpop.f32.mrf.mxu0  ;;  %v2908_v26 = vpop.f32.mrf.mxu1 }
 0x52f   : > { %v1330_v6 = vmax.f32 %v1328_v46, %v2906_v5  ;;  %v1351_v2 = vmax.f32 %v1349_v8, %v2908_v26 }
 0x536   : > { %v2910_v7 = vpop.f32.mrf.mxu0  ;;  %v2912_v27 = vpop.f32.mrf.mxu1 }
 0x537   : > { %v1331_v50 = vmax.f32 %v1329_v10, %v2910_v7  ;;  %v1352_v52 = vmax.f32 %v1350_v4, %v2912_v27 }
 0x53e   : > { %v2914_v9 = vpop.f32.mrf.mxu0  ;;  %v2916_v24 = vpop.f32.mrf.mxu1 }
 0x53f   : > { %v1332_v15 = vmax.f32 %v1330_v6, %v2914_v9  ;;  %v1353_v23 = vmax.f32 %v1351_v2, %v2916_v24 }
 0x546   : > { %v2918_v11 = vpop.f32.mrf.mxu0  ;;  %v2920_v25 = vpop.f32.mrf.mxu1 }
 0x547   : > { %v1333_v32 = vmax.f32 %v1331_v50, %v2918_v11  ;;  %v1354_v48 = vmax.f32 %v1352_v52, %v2920_v25 }
 0x54e   : > { %v2922_v45 = vpop.f32.mrf.mxu0  ;;  %v2924_v21 = vpop.f32.mrf.mxu1 }
 0x54f   : > { %v1334_v58 = vmax.f32 %v1332_v15, %v2922_v45  ;;  %v1355_v14 = vmax.f32 %v1353_v23, %v2924_v21 }
 0x556   : > { %v2938_v12 = vpop.f32.mrf.mxu0  ;;  %v2940_v44 = vpop.f32.mrf.mxu1 }
 0x557   : > { %v1335_v56 = vmax.f32 %v1333_v32, %v2938_v12  ;;  %v1356_v59 = vmax.f32 %v1354_v48, %v2940_v44 }
 0x55e   : > { %v2958_v42 = vpop.f32.mrf.mxu0  ;;  %v2960_v17 = vpop.f32.mrf.mxu1 }
 0x55f   : > { %v1336_v60 = vmax.f32 %v1334_v58, %v2958_v42  ;;  %v1357_v22 = vmax.f32 %v1355_v14, %v2960_v17 }
 0x561   : > { %v1337_v43 = vmax.f32 %v1335_v56, %v1336_v60  ;;  %v1358_v20 = vmax.f32 %v1356_v59, %v1357_v22 }
 0x563   : > { %v1338_v13 = vrot.slane %v1337_v43, 4  ;;  %v1359_v41 = vrot.slane %v1358_v20, 4 }
 0x565   : > { %v1339_v19 = vmax.f32 %v1337_v43, %v1338_v13  ;;  %v1360_v46 = vmax.f32 %v1358_v20, %v1359_v41 }
 0x567   : > { %v1340_v55 = vrot.slane %v1339_v19, 2  ;;  %v1361_v4 = vrot.slane %v1360_v46, 2 }
 0x569   : > { %v1341_v8 = vmax.f32 %v1339_v19, %v1340_v55  ;;  %v1362_v50 = vmax.f32 %v1360_v46, %v1361_v4 }
 0x56b   : > { %v1342_v10 = vrot.slane %v1341_v8, 1  ;;  %v1363_v32 = vrot.slane %v1362_v50, 1 }
 0x56d   : > { %v1343_v6 = vmax.f32 %v1341_v8, %v1342_v10 }
 0x56f   : > { %v2967_v2 = vmax.f32 %v2688_v61, %v1343_v6 }
 0x571   : > { %v1373_v52 = vsub.f32 %v2870_v37, %v2967_v2  ;;  %v1375_v15 = vsub.f32 %v2874_v18, %v2967_v2  ;;  %v1377_v23 = vsub.f32 %v2878_v35, %v2967_v2  ;;  %v1379_v48 = vsub.f32 %v2882_v36, %v2967_v2 }
 0x572   : > { %v1381_v58 = vsub.f32 %v2886_v53, %v2967_v2  ;;  %v1383_v59 = vsub.f32 %v2890_v57, %v2967_v2  ;;  %v1385_v37 = vsub.f32 %v2894_v63, %v2967_v2  ;;  %v1364_v18 = vmax.f32 %v1362_v50, %v1363_v32 }
 0x573   : > { %v1405_v14 = vmul.f32 1.442695, %v1373_v52  ;;  %v1409_v56 = vmul.f32 1.442695, %v1375_v15  ;;  %v1413_v60 = vmul.f32 1.442695, %v1377_v23  ;;  %v1387_v35 = vsub.f32 %v2898_v1, %v2967_v2 }
 0x574   : > { %v1417_v22 = vmul.f32 1.442695, %v1379_v48  ;;  %v1389_v36 = vsub.f32 %v2902_v3, %v2967_v2  ;;  %v1421_v53 = vmul.f32 1.442695, %v1381_v58  ;;  %v1391_v43 = vsub.f32 %v2906_v5, %v2967_v2 }
 0x575   : > { %2033 = vpow2.f32 %v1405_v14  ;;  %v1425_v57 = vmul.f32 1.442695, %v1383_v59  ;;  %v1393_v20 = vsub.f32 %v2910_v7, %v2967_v2  ;;  %v1429_v63 = vmul.f32 1.442695, %v1385_v37 }
 0x576   : > { %2035 = vpow2.f32 %v1409_v56  ;;  %v2992_v13 = vmax.f32 %v2690_v62, %v1364_v18  ;;  %v1395_v1 = vsub.f32 %v2914_v9, %v2967_v2  ;;  %v1433_v41 = vmul.f32 1.442695, %v1387_v35 }
 0x577   : > { %2037 = vpow2.f32 %v1413_v60  ;;  %v1401_v3 = vsub.f32 %v2938_v12, %v2967_v2  ;;  %v1437_v5 = vmul.f32 1.442695, %v1389_v36  ;;  %v1403_v7 = vsub.f32 %v2958_v42, %v2967_v2 }
 0x578   : > { %2039 = vpow2.f32 %v1417_v22  ;;  %v1441_v46 = vmul.f32 1.442695, %v1391_v43  ;;  %v1445_v8 = vmul.f32 1.442695, %v1393_v20  ;;  %v1374_v10 = vsub.f32 %v2872_v38, %v2992_v13 }
 0x579   : > { %2041 = vpow2.f32 %v1421_v53  ;;  %v1449_v12 = vmul.f32 1.442695, %v1395_v1  ;;  %v1376_v6 = vsub.f32 %v2876_v47, %v2992_v13  ;;  %v1399_v42 = vsub.f32 %v2922_v45, %v2967_v2 }
 0x57a   : > { %2043 = vpow2.f32 %v1425_v57  ;;  %v1461_v50 = vmul.f32 1.442695, %v1401_v3  ;;  %v1465_v23 = vmul.f32 1.442695, %v1403_v7  ;;  %v1378_v38 = vsub.f32 %v2880_v49, %v2992_v13 }
 0x57b   : > { %v2996_v19 = vpop.eup %2033  ;;  %2045 = vpow2.f32 %v1429_v63  ;;  %v1046_v32 = vrot.slane %v2833_v0, 4  ;;  %v1397_v47 = vsub.f32 %v2918_v11, %v2967_v2  ;;  %v1407_v58 = vmul.f32 1.442695, %v1374_v10 }
 0x57c   : > { %v3000_v55 = vpop.eup %2035  ;;  %2047 = vpow2.f32 %v1433_v41  ;;  %v1380_v56 = vsub.f32 %v2884_v33, %v2992_v13  ;;  %v1411_v59 = vmul.f32 1.442695, %v1376_v6  ;;  %v1457_v49 = vmul.f32 1.442695, %v1399_v42 }
 0x57d   : > { %v1471_v9 = vadd.f32 %v3000_v55, %v2996_v19  ;;  %v3008_v4 = vpop.eup %2037  ;;  %2049 = vpow2.f32 %v1437_v5  ;;  %v1067_v18 = vrot.slane %v2836_v54, 4  ;;  %v1382_v35 = vsub.f32 %v2888_v34, %v2992_v13 }
 0x57e   : > { %v3015_v15 = vpop.eup %2039  ;;  %2051 = vpow2.f32 %v1441_v46  ;;  %v1415_v22 = vmul.f32 1.442695, %v1378_v38  ;;  %v1047_v36 = vadd.f32 %v1046_v32, %v2833_v0  ;;  %v1453_v33 = vmul.f32 1.442695, %v1397_v47 }
 0x57f   : > { %v1472_v52 = vadd.f32 %v3008_v4, %v1471_v9  ;;  %v3020_v48 = vpop.eup %2041  ;;  %2053 = vpow2.f32 %v1445_v8  ;;  %v1384_v20 = vsub.f32 %v2892_v30, %v2992_v13  ;;  %v1419_v63 = vmul.f32 1.442695, %v1380_v56 }
 0x580   : > { %v3025_v14 = vpop.eup %2043  ;;  %2055 = vpow2.f32 %v1449_v12  ;;  %v1386_v0 = vsub.f32 %v2896_v31, %v2992_v13  ;;  %v1068_v41 = vadd.f32 %v1067_v18, %v2836_v54  ;;  %v1388_v5 = vsub.f32 %v2900_v28, %v2992_v13 }
 0x581   : > { %v1473_v45 = vadd.f32 %v3015_v15, %v1472_v52  ;;  %v3029_v60 = vpop.eup %2045  ;;  %2057 = vpow2.f32 %v1461_v50  ;;  %v1423_v7 = vmul.f32 1.442695, %v1382_v35  ;;  %v1048_v46 = vrot.slane %v1047_v36, 2 }
 0x582   : > { %v3033_v11 = vpop.eup %2047  ;;  %2059 = vpow2.f32 %v1465_v23  ;;  %v1390_v9 = vsub.f32 %v2904_v29, %v2992_v13  ;;  %v1392_v54 = vsub.f32 %v2908_v26, %v2992_v13  ;;  %v1427_v31 = vmul.f32 1.442695, %v1384_v20 }
 0x583   : > { %v1474_v37 = vadd.f32 %v3020_v48, %v1473_v45  ;;  %v3038_v53 = vpop.eup %2049  ;;  %2061 = vpow2.f32 %v1407_v58  ;;  %v1402_v6 = vsub.f32 %v2940_v44, %v2992_v13  ;;  %v1431_v42 = vmul.f32 1.442695, %v1386_v0 }
 0x584   : > { %v3041_v57 = vpop.eup %2051  ;;  %2063 = vpow2.f32 %v1411_v59  ;;  %v1069_v50 = vrot.slane %v1068_v41, 2  ;;  %v1404_v29 = vsub.f32 %v2960_v17, %v2992_v13  ;;  %v1435_v26 = vmul.f32 1.442695, %v1388_v5 }
 0x585   : > { %v1475_v43 = vadd.f32 %v3025_v14, %v1474_v37  ;;  %v3045_v1 = vpop.eup %2053  ;;  %2065 = vpow2.f32 %v1457_v49  ;;  %v3072_v23 = vadd.f32 %v1048_v46, %v1047_v36  ;;  %v1439_v47 = vmul.f32 1.442695, %v1390_v9 }
 0x586   : > { %v2056_v3 = vpop.eup %2055  ;;  %2067 = vpow2.f32 %v1415_v22  ;;  %v1367_v45 = vsub.f32 %v2688_v61, %v2967_v2  ;;  %v1394_v17 = vsub.f32 %v2912_v27, %v2992_v13  ;;  %v1443_v56 = vmul.f32 1.442695, %v1392_v54 }
 0x587   : > { %v1476_v34 = vadd.f32 %v3029_v60, %v1475_v43  ;;  %v3053_v30 = vpop.eup %2057  ;;  %2069 = vpow2.f32 %v1453_v33  ;;  %v1368_v59 = vsub.f32 %v2690_v62, %v2992_v13  ;;  %v1463_v18 = vmul.f32 1.442695, %v1402_v6 }
 0x588   : > { %v3058_v10 = vpop.eup %2059  ;;  %2071 = vpow2.f32 %v1419_v63  ;;  %v1396_v61 = vsub.f32 %v2916_v24, %v2992_v13  ;;  %v1400_v27 = vsub.f32 %v2924_v21, %v2992_v13  ;;  %v1467_v2 = vmul.f32 1.442695, %v1404_v29 }
 0x589   : > { %v1477_v8 = vadd.f32 %v3033_v11, %v1476_v34  ;;  %v3062_v12 = vpop.eup %2061  ;;  %1517 = vmatpush.msrb.mxu2 %v3058_v10  ;;  %2073 = vpow2.f32 %v1423_v7  ;;  %v1369_v33 = vmul.f32 1.442695, %v1367_v45  ;;  %v1398_v20 = vsub.f32 %v2920_v25, %v2992_v13 }
 0x58a   : > { %v3068_v52 = vpop.eup %2063  ;;  %2075 = vpow2.f32 %v1427_v31  ;;  %v1070_v63 = vadd.f32 %v1069_v50, %v1068_v41  ;;  %v1371_v34 = vmul.f32 1.442695, %v1368_v59  ;;  %v1447_v0 = vmul.f32 1.442695, %v1394_v17 }
 0x58b   : > { %v1478_v28 = vadd.f32 %v3038_v53, %v1477_v8  ;;  %v2066_v38 = vpop.eup %2065  ;;  %v1492_v44 = vadd.f32 %v3068_v52, %v3062_v12  ;;  %1518 = vmatpush.msrb.mxu2 %v3053_v30  ;;  %2077 = vpow2.f32 %v1431_v42  ;;  %v1459_v7 = vmul.f32 1.442695, %v1400_v27 }
 0x58c   : > { %v3080_v58 = vpop.eup %2067  ;;  %2079 = vpow2.f32 %v1435_v26  ;;  %v1451_v9 = vmul.f32 1.442695, %v1396_v61  ;;  %v1455_v13 = vmul.f32 1.442695, %v1398_v20  ;;  %v1050_v41 = vrot.slane %v3072_v23, 1 }
 0x58d   : > { %v1479_v32 = vadd.f32 %v3041_v57, %v1478_v28  ;;  %v2070_v49 = vpop.eup %2069  ;;  %v1493_v35 = vadd.f32 %v3080_v58, %v1492_v44  ;;  %1519 = vmatpush.msrb.mxu2 %v2066_v38  ;;  %2081 = vpow2.f32 %v1439_v47  ;;  %v1071_v6 = vrot.slane %v1070_v63, 1 }
 0x58e   : > { %v3088_v22 = vpop.eup %2071  ;;  %2083 = vpow2.f32 %v1443_v56 }
 0x58f   : > { %v1480_v37 = vadd.f32 %v3045_v1, %v1479_v32  ;;  %v1494_v62 = vadd.f32 %v3088_v22, %v1493_v35  ;;  %1520 = vmatpush.msrb.mxu2 %v2070_v49  ;;  %v3095_v43 = vpop.eup %2073  ;;  %2085 = vpow2.f32 %v1463_v18 }
 0x590   : > { %v3100_v5 = vpop.eup %2075  ;;  %2087 = vpow2.f32 %v1467_v2 }
 0x591   : > { %v1481_v36 = vadd.f32 %v2056_v3, %v1480_v37  ;;  %v1495_v21 = vadd.f32 %v3095_v43, %v1494_v62  ;;  %1521 = vmatpush.msrb.mxu2 %v2056_v3  ;;  %v3102_v46 = vpop.eup %2077  ;;  %2089 = vpow2.f32 %v1369_v33  ;;  %v681_v62 = vadd.f32 %v2860_v16, %v2805_v51 }
 0x592   : > { %v2080_v25 = vpop.eup %2079  ;;  %2091 = vpow2.f32 %v1371_v34 }
 0x593   : > { %v1482_v24 = vadd.f32 %v2070_v49, %v1481_v36  ;;  %v1496_v54 = vadd.f32 %v3100_v5, %v1495_v21  ;;  %1522 = vmatpush.msrb.mxu2 %v3045_v1  ;;  %v2082_v31 = vpop.eup %2081  ;;  %2093 = vpow2.f32 %v1447_v0 }
 0x594   : > { %v2084_v42 = vpop.eup %2083  ;;  %2095 = vpow2.f32 %v1459_v7 }
 0x595   : > { %v1483_v8 = vadd.f32 %v2066_v38, %v1482_v24  ;;  %v1497_v28 = vadd.f32 %v3102_v46, %v1496_v54  ;;  %1523 = vmatpush.msrb.mxu2 %v3041_v57  ;;  %v2086_v50 = vpop.eup %2085  ;;  %2097 = vpow2.f32 %v1451_v9  ;;  %v1051_v38 = vadd.f32 %v1050_v41, %v3072_v23 }
 0x596   : > { %v2088_v26 = vpop.eup %2087  ;;  %2099 = vpow2.f32 %v1455_v13  ;;  %v1072_v57 = vadd.f32 %v1071_v6, %v1070_v63 }
 0x597   : > { %v1484_v3 = vadd.f32 %v3053_v30, %v1483_v8  ;;  %v1498_v29 = vadd.f32 %v2080_v25, %v1497_v28  ;;  %1524 = vmatpush.msrb.mxu2 %v3038_v53  ;;  %v3113_v30 = vpop.eup %2089  ;;  %1537 = vmatpush.msrb.mxu3 %v2088_v26 }
 0x598   : > { %v3116_v44 = vpop.eup %2091 }
 0x599   : > { %v1485_v1 = vadd.f32 %v3058_v10, %v1484_v3  ;;  %v1499_v47 = vadd.f32 %v2082_v31, %v1498_v29  ;;  %1525 = vmatpush.msrb.mxu2 %v3033_v11  ;;  %v1469_v10 = vmul.f32 %v3113_v30, %v1051_v38  ;;  %v2094_v45 = vpop.eup %2093  ;;  %1538 = vmatpush.msrb.mxu3 %v2086_v50 }
 0x59a   : > { %v1470_v53 = vmul.f32 %v3116_v44, %v1072_v57  ;;  %v2096_v23 = vpop.eup %2095  ;;  %v1516_v3 = vmul.f32 %v3116_v44, %v2866_v40  ;;  %v2106_v44 = vld [vmem:[%s2523_s19 + $0x8] sm:$0xff] }
 0x59b   : > { %v1486_v32 = vrot.slane %v1485_v1, 4  ;;  %v1500_v56 = vadd.f32 %v2084_v42, %v1499_v47  ;;  %1526 = vmatpush.msrb.mxu2 %v3029_v60  ;;  %v2098_v59 = vpop.eup %2097  ;;  %1539 = vmatpush.msrb.mxu3 %v2096_v23 }
 0x59c   : > { %v2100_v11 = vpop.eup %2099 }
 0x59d   : > { %v1487_v17 = vadd.f32 %v1486_v32, %v1485_v1  ;;  %v1501_v37 = vadd.f32 %v2094_v45, %v1500_v56  ;;  %1527 = vmatpush.msrb.mxu2 %v3025_v14  ;;  %1540 = vmatpush.msrb.mxu3 %v2100_v11  ;;  %v2105_v32 = vld [vmem:[%s2523_s19] sm:$0xff] }
 0x59f   : > { %v1488_v49 = vrot.slane %v1487_v17, 2  ;;  %v1502_v35 = vadd.f32 %v2098_v59, %v1501_v37  ;;  %1528 = vmatpush.msrb.mxu2 %v3020_v48  ;;  %1541 = vmatpush.msrb.mxu3 %v2098_v59 }
 0x5a1   : > { %v1489_v18 = vadd.f32 %v1488_v49, %v1487_v17  ;;  %v1503_v27 = vadd.f32 %v2100_v11, %v1502_v35  ;;  %1529 = vmatpush.msrb.mxu2 %v3015_v15  ;;  %1542 = vmatpush.msrb.mxu3 %v2094_v45 }
 0x5a3   : > { %v1490_v61 = vrot.slane %v1489_v18, 1  ;;  %v1504_v2 = vadd.f32 %v2096_v23, %v1503_v27  ;;  %1530 = vmatpush.msrb.mxu2 %v3008_v4  ;;  %1543 = vmatpush.msrb.mxu3 %v2084_v42 }
 0x5a5   : > { %v1491_v60 = vadd.f32 %v1490_v61, %v1489_v18  ;;  %v1505_v36 = vadd.f32 %v2086_v50, %v1504_v2  ;;  %1531 = vmatpush.msrb.mxu2 %v3000_v55  ;;  %1544 = vmatpush.msrb.mxu3 %v2082_v31 }
 0x5a7   : > { %v1513_v14 = vadd.f32 %v1491_v60, %v1469_v10  ;;  %v1506_v33 = vadd.f32 %v2088_v26, %v1505_v36  ;;  %1532 = vmatpush.msrb.mxu2 %v2996_v19  ;;  %1545 = vmatpush.msrb.mxu3 %v2080_v25  ;;  %v1589_v25 = vld [vmem:[#allocation10] sm:$0xff]  ;;  %v1594_v26 = vpop.permute.xlu1 %1593 }
 0x5a8   : > { %1533 = vmatmul.f32.vlgmr.msrb.gmra.mxu2 %v681_v62 }
 0x5a9   : > { %v1507_v48 = vrot.slane %v1506_v33, 4  ;;  %1546 = vmatpush.msrb.mxu3 %v3102_v46  ;;  %2101 = vrcp.f32 %v1513_v14  ;;  %v1570_v21 = vand.u32 2147483648, %v1513_v14  ;;  %vm1564_vm6 = vweird.f32 %v1513_v14 }
 0x5ab   : > { %v1508_v15 = vadd.f32 %v1507_v48, %v1506_v33  ;;  %1547 = vmatpush.msrb.mxu3 %v3100_v5  ;;  %v1571_v7 = vor.u32 1.1754944e-38, %v1570_v21 }
 0x5ad   : > { %v1509_v20 = vrot.slane %v1508_v15, 2  ;;  %1548 = vmatpush.msrb.mxu3 %v3095_v43 }
 0x5af   : > { %v1510_v4 = vadd.f32 %v1509_v20, %v1508_v15  ;;  %1549 = vmatpush.msrb.mxu3 %v3088_v22  ;;  %v2102_v19 = vpop.eup %2101  ;;  %v1568_v22 = vand.u32 2147483647, %v1513_v14 }
 0x5b0   : > { %v1560_v63 = vmul.f32 %v2102_v19, %v1513_v14  ;;  %vm1565_vm5 = vweird.f32 %v2102_v19 }
 0x5b1   : > { %v1511_v55 = vrot.slane %v1510_v4, 1  ;;  %1550 = vmatpush.msrb.mxu3 %v3080_v58  ;;  %vm1566_vm7 = vmor %vm1564_vm6, %vm1565_vm5  ;;  %vm1569_vm8 = vcmp.eq.f32.partialorder %v1568_v22, 8.507059e+37 }
 0x5b2   : > { %v1561_v34 = vsub.f32 1.0, %v1560_v63 }
 0x5b3   : > { %v1512_v51 = vadd.f32 %v1511_v55, %v1510_v4  ;;  %1551 = vmatpush.msrb.mxu3 %v3068_v52  ;;  %v1515_v52 = vmul.f32 %v3113_v30, %v2864_v39 }
 0x5b4   : > { %v1562_v24 = vmul.f32 %v2102_v19, %v1561_v34 }
 0x5b5   : > { %v1514_v16 = vadd.f32 %v1512_v51, %v1470_v53  ;;  %1552 = vmatpush.msrb.mxu3 %v3062_v12 }
 0x5b6   : > { %1553 = vmatmul.f32.vlgmr.msrb.gmra.mxu3 %v681_v62  ;;  %v1563_v0 = vadd.f32 %v2102_v19, %v1562_v24 }
 0x5b7   : > { %2103 = vrcp.f32 %v1514_v16  ;;  %v1584_v31 = vand.u32 2147483648, %v1514_v16  ;;  %vm1578_vm10 = vweird.f32 %v1514_v16  ;;  %v1582_v39 = vand.u32 2147483647, %v1514_v16 }
 0x5b8   : > { %v1567_v58 = vsel %vm1566_vm7, %v2102_v19, %v1563_v0 }
 0x5b9   : > { %v1572_v8 = vsel %vm1569_vm8, %v1571_v7, %v1567_v58  ;;  %v1585_v42 = vor.u32 1.1754944e-38, %v1584_v31  ;;  %vm1583_vm12 = vcmp.eq.f32.partialorder %v1582_v39, 8.507059e+37 }
 0x5bd   : > { %v2104_v43 = vpop.eup %2103 }
 0x5be   : > { %v1574_v5 = vmul.f32 %v2104_v43, %v1514_v16  ;;  %vm1579_vm9 = vweird.f32 %v2104_v43 }
 0x5bf   : > { %vm1580_vm11 = vmor %vm1578_vm10, %vm1579_vm9 }
 0x5c0   : > { %v1575_v54 = vsub.f32 1.0, %v1574_v5 }
 0x5c2   : > { %v1576_v13 = vmul.f32 %v2104_v43, %v1575_v54 }
 0x5c4   : > { %v1577_v41 = vadd.f32 %v2104_v43, %v1576_v13 }
 0x5c6   : > { %v1581_v28 = vsel %vm1580_vm11, %v2104_v43, %v1577_v41 }
 0x5c7   : > { %v1586_v1 = vsel %vm1583_vm12, %v1585_v42, %v1581_v28 }
 0x62b   : > { %v1534_v12 = vpop.f32.mrf.mxu2 }
 0x62c   : > { %v1557_v46 = vadd.f32 %v1534_v12, %v1515_v52 }
 0x62e   : > { %v1587_v9 = vmul.f32 %v1572_v8, %v1557_v46 }
 0x630   : > { %1614 = vmatpush.msra.mxu2 %v1587_v9 }
 0x631   : > { %1855 = vmatmul.msk.f32.vlgmr.msra.gmra.mxu2 %vm539_vm4, %v1589_v25 }
 0x639   : > { %v1554_v6 = vpop.f32.mrf.mxu3 }
 0x63a   : > { %v1558_v50 = vadd.f32 %v1554_v6, %v1516_v3 }
 0x63c   : > { %v1588_v29 = vmul.f32 %v1586_v1, %v1558_v50 }
 0x63e   : > { %1634 = vmatpush.msra.mxu3 %v1588_v29 }
 0x63f   : > { %1856 = vmatmul.msk.f32.vlgmr.msra.gmra.mxu3 %vm539_vm4, %v1589_v25 }
 0x6b4   : > { %v1616_v38 = vpop.f32.mrf.mxu2 }
 0x6b5   : > { %v1617_v30 = vadd.f32 %v1616_v38, %v1594_v26 }
 0x6b7   : > { %v1639_v47 = vadd.f32 %v2105_v32, %v1617_v30 }
 0x6b9   : > { %1641 = vst [vmem:[%s462_s27] sm:$0xff] %v1639_v47 }
 0x6c2   : > { %v1636_v40 = vpop.f32.mrf.mxu3 }
 0x6c3   : > { %v1637_v57 = vadd.f32 %v1636_v40, %v1594_v26 }
 0x6c5   : > { %v1640_v10 = vadd.f32 %v2106_v44, %v1637_v57 }
 0x6c7   : > { %1642 = vst [vmem:[%s462_s27 + $0x8] sm:$0xff] %v1640_v10 }
 0x6c8   : > { %2284 = shalt.err (!%p2281_p9)
}
 0x6c9   : > { %1890 = dma.vmem_to_hbm [thread:$0]  (%p2486_p5), %s1658_s9, 256, %s1660_s25, %s1644_s21  }
 0x6ca PF: > { %s1671_s26 = sand.u32 1, %s2319_s17   ;;  %p3209_p10 = scmp.ge.s32.totalorder %s2331_s20, 2 }
 0x6cb   : > { %s1672_s19 = scalar_lea.sflag [#allocation4], %s1671_s26 }
 0x6cc   : > { %p1910_p13 = pnand %p3209_p10, %p2490_p6 }
 0x6ce   : > { %p1911_p11 = pneg %p1910_p13 }
 0x6d0   : > { %2314 = dma.done.wait (%p1911_p11), %s1672_s19, 256  }
 0x6d1   : > { %2316 = vsyncadd (%p1911_p11), %s1672_s19, 4294967040  ;;  %s3210_s27 = sld [smem:[#allocation16_spill]]  ;;  %p26_p0 = scmp.ge.s32.totalorder %s2460_s14, 4  }
 0x6d2   : > { %s3211_s19 = sld [smem:[#allocation17_spill]]  ;;  %s3212_s17 = smov %s2323_s18 }
 0x6d3   : > { %s3214_s20 = smov %s2460_s14  ;;  %28 = sbr.rel (!%p26_p0) target bundleno = 12 (0xc), region = 125 }
 0x6d7   : > { %s3213_s18 = smov %s3210_s27 }
 0x6d8   :  { %1678 = vsyncpa [#allocation3], 1 }
 0x6d9   :  { %1680 = vsyncpa [#allocation3 + $0x1], 1 }
 0x6da   :  { %1681 = vsyncpa [#allocation6], 1 }
 0x6db   :  { %1682 = vsyncpa [#allocation9], 1 }
 0x6dc   :  { %1683 = vsyncpa [#allocation4], 1 }
 0x6dd   :  { %1685 = vsyncpa [#allocation4 + $0x1], 1 }

</bundles_post_ra>
